<compile_context>
chip_gen: v7x
topology: tpu7x:2x2x1
jax: 0.10.0
libtpu: 0.0.40
codegen_flags: <defaults>
</compile_context>

<pallas_src>
import jax
import jax.numpy as jnp
from jax import lax
from jax.experimental import pallas as pl
from jax.experimental.pallas import tpu as pltpu

LANE = 128
SUBLANE = 8


def _round_up(x, m):
    return (x + m - 1) // m * m


_VMEM_LIMIT = None


def _vmem_limit_bytes():
    """Per-generation scoped VMEM limit (v5e/v6e ~96 MiB, v7x ~48 MiB)."""
    global _VMEM_LIMIT
    if _VMEM_LIMIT is None:
        cap = None
        try:
            cap = getattr(pltpu.get_tpu_info(), "vmem_capacity_bytes", None)
        except Exception:
            cap = None
        if not cap:
            cap = 64 * 1024 * 1024          # conservative (v7x per-TC physical)
        _VMEM_LIMIT = int(min(int(cap), 128 * 1024 * 1024) * 3 // 4)
    return _VMEM_LIMIT


# ----------------------------------------------------------------------------
# Fused encoder: conv1 + ReLU + conv2 + ReLU in one kernel.
# Rows are already in time-major, batch-padded order; only z2 touches HBM.
# ----------------------------------------------------------------------------
def _fused_encoder_kernel(x_ref, w1_ref, b1_ref, w2_ref, b2_ref, o_ref):
    # x_ref : (K2, rows, Kin1)  bf16   -- per-tap layer-1 patches
    # w1_ref: (Kin1, c1p)       bf16   -- layer-1 weight
    # w2_ref: (K2, c1p, c2p)    bf16   -- layer-2 weight, one slab per tap
    k2 = x_ref.shape[0]
    w1 = w1_ref[...]
    b1 = b1_ref[...]
    acc = None
    for k in range(k2):                                   # K2 is small & static
        z1 = jnp.dot(x_ref[k], w1, preferred_element_type=jnp.float32) + b1
        z1 = jnp.maximum(z1, 0.0).astype(jnp.bfloat16)    # layer-1 ReLU (on-chip)
        p = jnp.dot(z1, w2_ref[k], preferred_element_type=jnp.float32)
        acc = p if acc is None else acc + p
    o_ref[...] = jnp.maximum(acc + b2_ref[...], 0.0).astype(o_ref.dtype)


def fused_encoder(x_taps, w1_mat, b1_row, w2_3d, b2_row, *, rows_per_block):
    """x_taps: (K2, R, Kin1) bf16 with R = T2*Bp (time-major, batch-padded rows).
    Returns z2 rows (R, c2p) bf16 in the same time-major order."""
    K2, R, Kin1 = x_taps.shape
    c1p = w1_mat.shape[1]
    c2p = w2_3d.shape[2]
    rows_per_block = min(rows_per_block, R)
    grid = (pl.cdiv(R, rows_per_block),)
    return pl.pallas_call(
        _fused_encoder_kernel,
        out_shape=jax.ShapeDtypeStruct((R, c2p), jnp.bfloat16),
        grid=grid,
        in_specs=[
            pl.BlockSpec((K2, rows_per_block, Kin1), lambda t: (0, t, 0)),
            pl.BlockSpec((Kin1, c1p), lambda t: (0, 0)),
            pl.BlockSpec((1, c1p), lambda t: (0, 0)),
            pl.BlockSpec((K2, c1p, c2p), lambda t: (0, 0, 0)),
            pl.BlockSpec((1, c2p), lambda t: (0, 0)),
        ],
        out_specs=pl.BlockSpec((rows_per_block, c2p), lambda t: (t, 0)),
        compiler_params=pltpu.CompilerParams(
            dimension_semantics=("parallel",),
            vmem_limit_bytes=_vmem_limit_bytes()),
    )(x_taps, w1_mat, b1_row, w2_3d, b2_row)


# ----------------------------------------------------------------------------
# AR (GRU over time, chunked) + linear head, fused in one kernel.
# ----------------------------------------------------------------------------
def _make_gru_head_kernel(t_valid):
    def kernel(z_ref, wih_ref, whh_ref, bih_ref, bhh_ref,
               wout_ref, bout_ref, out_ref, h_ref, gi_ref):
        tb = pl.program_id(0)
        Tc, Bp, Dp = z_ref.shape
        Hp = whh_ref.shape[0]

        @pl.when(tb == 0)
        def _():
            h_ref[...] = jnp.zeros_like(h_ref)

        # Input projection for the whole chunk: one MXU matmul (bf16 in, f32 acc),
        # spilled to a VMEM scratch that the recurrence indexes per time step.
        gi = jnp.dot(z_ref[...].reshape(Tc * Bp, Dp), wih_ref[...],
                     preferred_element_type=jnp.float32) + bih_ref[...]
        gi_ref[...] = gi.reshape(Tc, Bp, 3 * Hp)

        w_hh = whh_ref[...]
        b_hh = bhh_ref[...]
        base = tb * Tc

        def step(t, h):
            g = gi_ref[t]                                        # (Bp, 3*Hp)
            gh = jnp.dot(h.astype(jnp.bfloat16), w_hh,
                         preferred_element_type=jnp.float32) + b_hh
            # Gate blocks are 128-lane aligned (Hp is a multiple of 128).
            r = jax.nn.sigmoid(g[:, 0 * Hp:1 * Hp] + gh[:, 0 * Hp:1 * Hp])
            u = jax.nn.sigmoid(g[:, 1 * Hp:2 * Hp] + gh[:, 1 * Hp:2 * Hp])
            n = jnp.tanh(g[:, 2 * Hp:3 * Hp] + r * gh[:, 2 * Hp:3 * Hp])
            h_new = (1.0 - u) * n + u * h
            # Tail mask for the cdiv grid (steps past T2 leave h unchanged).
            return jnp.where(base + t < t_valid, h_new, h)

        h = lax.fori_loop(0, Tc, step, h_ref[...], unroll=min(8, Tc))
        h_ref[...] = h

        @pl.when(tb == pl.num_programs(0) - 1)
        def _():
            # ffn(c[:, 0, -1, :]) == linear head on the final hidden state.
            out_ref[...] = (jnp.dot(h.astype(jnp.bfloat16), wout_ref[...],
                                    preferred_element_type=jnp.float32)
                            + bout_ref[...])
    return kernel


def gru_head(z_t, w_ih, w_hh, b_ih, b_hh, w_out, b_out, *, t_chunk, t_valid):
    T, Bp, Dp = z_t.shape
    Hp = w_hh.shape[0]
    Cp = w_out.shape[1]
    t_chunk = min(t_chunk, T)
    grid = (pl.cdiv(T, t_chunk),)
    return pl.pallas_call(
        _make_gru_head_kernel(t_valid),
        out_shape=jax.ShapeDtypeStruct((Bp, Cp), jnp.float32),
        grid=grid,
        in_specs=[
            pl.BlockSpec((t_chunk, Bp, Dp), lambda t: (t, 0, 0)),
            pl.BlockSpec((Dp, 3 * Hp), lambda t: (0, 0)),
            pl.BlockSpec((Hp, 3 * Hp), lambda t: (0, 0)),
            pl.BlockSpec((1, 3 * Hp), lambda t: (0, 0)),
            pl.BlockSpec((1, 3 * Hp), lambda t: (0, 0)),
            pl.BlockSpec((Hp, Cp), lambda t: (0, 0)),
            pl.BlockSpec((1, Cp), lambda t: (0, 0)),
        ],
        out_specs=pl.BlockSpec((Bp, Cp), lambda t: (0, 0)),
        scratch_shapes=[pltpu.VMEM((Bp, Hp), jnp.float32),
                        pltpu.VMEM((t_chunk, Bp, 3 * Hp), jnp.float32)],
        compiler_params=pltpu.CompilerParams(
            dimension_semantics=("arbitrary",),
            vmem_limit_bytes=_vmem_limit_bytes()),
    )(z_t, w_ih, w_hh, b_ih, b_hh, w_out, b_out)


# ----------------------------------------------------------------------------
# Parameter re-layout (JAX glue; lane-padded, gate-aligned, bf16 MXU operands).
# ----------------------------------------------------------------------------
def _prep_conv_weight(w, b, cin_pad, cout_pad):
    # w: (Cout, Cin, K) PyTorch Conv1d layout -> (K*cin_pad, cout_pad) bf16 weight
    Cout, Cin, K = w.shape
    w_t = jnp.transpose(w, (2, 1, 0))                               # (K, Cin, Cout)
    w_t = jnp.pad(w_t, ((0, 0), (0, cin_pad - Cin), (0, cout_pad - Cout)))
    w_mat = w_t.reshape(K * cin_pad, cout_pad).astype(jnp.bfloat16)
    b_row = jnp.pad(b, (0, cout_pad - Cout)).reshape(1, cout_pad).astype(jnp.float32)
    return w_mat, b_row


def _prep_gate_matrix(w, H, in_pad, h_pad, dtype):
    # w: (in_dim, 3H), gate order [r, z, n] -> (in_pad, 3*h_pad), gates lane-aligned.
    in_dim = w.shape[0]
    out = jnp.zeros((in_pad, 3 * h_pad), jnp.float32)
    for g in range(3):
        out = out.at[:in_dim, g * h_pad: g * h_pad + H].set(w[:, g * H:(g + 1) * H])
    return out.astype(dtype)


def _prep_gate_bias(b, H, h_pad):
    b = b.reshape(-1)
    out = jnp.zeros((1, 3 * h_pad), jnp.float32)
    for g in range(3):
        out = out.at[0, g * h_pad: g * h_pad + H].set(b[g * H:(g + 1) * H])
    return out


# ----------------------------------------------------------------------------
# Full forward (mirrors SupervisedModel.forward)
# ----------------------------------------------------------------------------
def supervised_forward(x_ncw, p):
    B, Cin, L = x_ncw.shape
    Cout1, _, K1 = p["w1"].shape
    Cout2, _, K2 = p["w2"].shape
    H = p["w_hh"].shape[0]
    n_classes = p["w_out"].shape[1]

    assert L % (K1 * K2) == 0, "demo encoder uses kernel==stride downsampling"
    T2 = L // (K1 * K2)
    Kin1 = K1 * Cin

    c1p = _round_up(Cout1, LANE)
    c2p = _round_up(Cout2, LANE)
    hp = _round_up(H, LANE)
    cp = _round_up(n_classes, LANE)
    bp = _round_up(B, SUBLANE)

    w1_mat, b1_row = _prep_conv_weight(p["w1"], p["b1"], Cin, c1p)
    w2_mat, b2_row = _prep_conv_weight(p["w2"], p["b2"], c1p, c2p)
    w2_3d = w2_mat.reshape(K2, c1p, c2p)
    w_ih = _prep_gate_matrix(p["w_ih"], H, c2p, hp, jnp.bfloat16)
    w_hh = _prep_gate_matrix(p["w_hh"], H, hp, hp, jnp.bfloat16)
    b_ih = _prep_gate_bias(p["b_ih"], H, hp)
    b_hh = _prep_gate_bias(p["b_hh"], H, hp)
    w_out = jnp.pad(p["w_out"], ((0, hp - H), (0, cp - n_classes))).astype(jnp.bfloat16)
    b_out = jnp.pad(p["b_out"].reshape(1, -1),
                    ((0, 0), (0, cp - n_classes))).astype(jnp.float32)

    # --- build time-major, batch-padded, per-tap layer-1 patches (tiny tensor) --
    x_blc = jnp.transpose(x_ncw, (0, 2, 1))                     # NCW -> (B, L, Cin)
    x4 = x_blc.reshape(B, T2, K2, Kin1)                         # view reshape
    x4 = jnp.transpose(x4, (2, 1, 0, 3))                        # (K2, T2, B, Kin1)
    x4 = jnp.pad(x4, ((0, 0), (0, 0), (0, bp - B), (0, 0)))     # pad batch to 8
    x_taps = x4.reshape(K2, T2 * bp, Kin1).astype(jnp.bfloat16)

    # --- fused encoder (gEnc): conv1+ReLU+conv2+ReLU, z2 straight to time-major -
    rows_per_block = min(T2, max(1, 2048 // bp)) * bp
    z2_rows = fused_encoder(x_taps, w1_mat, b1_row, w2_3d, b2_row,
                            rows_per_block=rows_per_block)      # (T2*bp, c2p) bf16
    z_t = z2_rows.reshape(T2, bp, c2p)                          # free view reshape

    # --- AR (gAR: GRU) + head ------------------------------------------------
    logits_pad = gru_head(z_t, w_ih, w_hh, b_ih, b_hh, w_out, b_out,
                          t_chunk=min(T2, 128), t_valid=T2)
    return logits_pad[:B, :n_classes]


# ----------------------------------------------------------------------------
# Pure-JAX f32 reference (same math, no Pallas / no padding) for a sanity check.
# ----------------------------------------------------------------------------
def reference_forward(x_ncw, p):
    def conv(x_blc, w, b, stride):
        B, L, Cin = x_blc.shape
        Cout, _, K = w.shape
        T = (L - K) // stride + 1
        idx = (jnp.arange(T) * stride)[:, None] + jnp.arange(K)[None, :]
        patches = jnp.transpose(x_blc[:, idx, :], (0, 1, 3, 2)).reshape(B * T, Cin * K)
        y = patches @ w.reshape(Cout, Cin * K).T + b[None, :]
        return jnp.maximum(y, 0.0).reshape(B, T, Cout)

    x = jnp.transpose(x_ncw, (0, 2, 1))
    z = conv(x, p["w1"], p["b1"], p["w1"].shape[2])
    z = conv(z, p["w2"], p["b2"], p["w2"].shape[2])
    B, T, D = z.shape
    H = p["w_hh"].shape[0]
    h = jnp.zeros((B, H), jnp.float32)
    for t in range(T):
        gi = z[:, t, :] @ p["w_ih"] + p["b_ih"]
        gh = h @ p["w_hh"] + p["b_hh"]
        r = jax.nn.sigmoid(gi[:, 0:H] + gh[:, 0:H])
        zg = jax.nn.sigmoid(gi[:, H:2 * H] + gh[:, H:2 * H])
        n = jnp.tanh(gi[:, 2 * H:] + r * gh[:, 2 * H:])
        h = (1.0 - zg) * n + zg * h
    return h @ p["w_out"] + p["b_out"]


if __name__ == "__main__":
    # Small deterministic config
    B, C_in, L = 2, 1, 64            # raw waveform (B, 1, 64)
    enc_dim, ar_dim, n_classes = 32, 32, 8
    K1, K2 = 4, 2                    # encoder kernels (= strides) -> T = 8

    key = jax.random.PRNGKey(0)
    ks = jax.random.split(key, 12)
    s = 0.1
    params = {
        "w1": s * jax.random.normal(ks[0], (enc_dim, C_in, K1), jnp.float32),
        "b1": s * jax.random.normal(ks[1], (enc_dim,), jnp.float32),
        "w2": s * jax.random.normal(ks[2], (enc_dim, enc_dim, K2), jnp.float32),
        "b2": s * jax.random.normal(ks[3], (enc_dim,), jnp.float32),
        # GRU weights stored transposed vs PyTorch: (in, 3H) and (H, 3H)
        "w_ih": s * jax.random.normal(ks[4], (enc_dim, 3 * ar_dim), jnp.float32),
        "w_hh": s * jax.random.normal(ks[5], (ar_dim, 3 * ar_dim), jnp.float32),
        "b_ih": s * jax.random.normal(ks[6], (1, 3 * ar_dim), jnp.float32),
        "b_hh": s * jax.random.normal(ks[7], (1, 3 * ar_dim), jnp.float32),
        # Linear head: (ar_dim, n_classes)
        "w_out": s * jax.random.normal(ks[8], (ar_dim, n_classes), jnp.float32),
        "b_out": s * jax.random.normal(ks[9], (1, n_classes), jnp.float32),
    }
    x = jax.random.normal(ks[10], (B, C_in, L), jnp.float32)

    logits = jax.block_until_ready(jax.jit(supervised_forward)(x, params))
    ref = jax.block_until_ready(reference_forward(x, params))

    assert logits.shape == (B, n_classes), logits.shape
    assert jnp.all(jnp.isfinite(logits))
    # bf16 MXU operands (f32 accumulate/elementwise) -> loosened tolerance vs f32 ref.
    assert jnp.allclose(logits, ref, atol=2e-2, rtol=2e-2), (logits, ref)
    print("KERNEL_OK")
</pallas_src>

<mosaic_0001>
module attributes {stable_mosaic.version = 11 : i64} {
  func.func @kernel(%arg0: i32, %arg1: memref<8x8x128xbf16, #tpu.memory_space<vmem>>, %arg2: memref<128x384xbf16, #tpu.memory_space<vmem>>, %arg3: memref<128x384xbf16, #tpu.memory_space<vmem>>, %arg4: memref<1x384xf32, #tpu.memory_space<vmem>>, %arg5: memref<1x384xf32, #tpu.memory_space<vmem>>, %arg6: memref<128x128xbf16, #tpu.memory_space<vmem>>, %arg7: memref<1x128xf32, #tpu.memory_space<vmem>>, %arg8: memref<8x128xf32, #tpu.memory_space<vmem>>, %arg9: memref<8x128xf32, #tpu.memory_space<vmem>>, %arg10: memref<8x8x384xf32, #tpu.memory_space<vmem>>) attributes {dimension_semantics = [#tpu.dimension_semantics<arbitrary>], iteration_bounds = array<i64: 1>, scalar_prefetch = 0 : i64, scratch_operands = 2 : i64, tpu.core_type = #tpu.core_type<tc>, window_params = [{transform_indices = @transform_0, window_bounds = array<i64: 8, 8, 128>}, {pipeline_mode = #tpu.pipeline_mode<synchronous>, transform_indices = @transform_1, window_bounds = array<i64: 128, 384>}, {pipeline_mode = #tpu.pipeline_mode<synchronous>, transform_indices = @transform_2, window_bounds = array<i64: 128, 384>}, {pipeline_mode = #tpu.pipeline_mode<synchronous>, transform_indices = @transform_3, window_bounds = array<i64: 1, 384>}, {pipeline_mode = #tpu.pipeline_mode<synchronous>, transform_indices = @transform_4, window_bounds = array<i64: 1, 384>}, {pipeline_mode = #tpu.pipeline_mode<synchronous>, transform_indices = @transform_5, window_bounds = array<i64: 128, 128>}, {pipeline_mode = #tpu.pipeline_mode<synchronous>, transform_indices = @transform_6, window_bounds = array<i64: 1, 128>}, {pipeline_mode = #tpu.pipeline_mode<synchronous>, transform_indices = @transform_7, window_bounds = array<i64: 8, 128>}]} {
    %c0_i32 = arith.constant 0 : i32
    %0 = arith.cmpi eq, %arg0, %c0_i32 : i32
    %1 = arith.extui %0 : i1 to i32
    %c0_i32_0 = arith.constant 0 : i32
    %2 = arith.cmpi ne, %1, %c0_i32_0 : i32
    scf.if %2 {
      %cst_78 = arith.constant 0.000000e+00 : f32
      %308 = vector.broadcast %cst_78 : f32 to vector<8x128xf32>
      %c0_79 = arith.constant 0 : index
      %c0_80 = arith.constant 0 : index
      %309 = vector.load %arg9[%c0_79, %c0_80] : memref<8x128xf32, #tpu.memory_space<vmem>>, vector<8x128xf32>
      tpu.vector_store %arg9[%c0_79, %c0_80], %308 {strides = array<i32>} : memref<8x128xf32, #tpu.memory_space<vmem>>, vector<8x128xf32>,
    } else {
    }
    %c0 = arith.constant 0 : index
    %c0_1 = arith.constant 0 : index
    %c0_2 = arith.constant 0 : index
    %3 = vector.load %arg1[%c0, %c0_1, %c0_2] : memref<8x8x128xbf16, #tpu.memory_space<vmem>>, vector<8x8x128xbf16>
    %4 = vector.shape_cast %3 : vector<8x8x128xbf16> to vector<64x128xbf16>
    %c0_3 = arith.constant 0 : index
    %c0_4 = arith.constant 0 : index
    %5 = vector.load %arg2[%c0_3, %c0_4] : memref<128x384xbf16, #tpu.memory_space<vmem>>, vector<128x384xbf16>
    %cst = arith.constant dense<0.000000e+00> : vector<64x384xf32>
    %6 = tpu.matmul %4, %5, %cst {dimension_numbers = #tpu.dot_dimension_numbers<[1], [0], [0], [1], [0, 0, 1, 1], [], []>} : vector<64x128xbf16>, vector<128x384xbf16>, vector<64x384xf32> -> vector<64x384xf32>
    %c0_5 = arith.constant 0 : index
    %c0_6 = arith.constant 0 : index
    %7 = vector.load %arg4[%c0_5, %c0_6] : memref<1x384xf32, #tpu.memory_space<vmem>>, vector<1x384xf32>
    %8 = vector.broadcast %7 : vector<1x384xf32> to vector<64x384xf32>
    %9 = arith.addf %6, %8 : vector<64x384xf32>
    %10 = vector.shape_cast %9 : vector<64x384xf32> to vector<8x8x384xf32>
    %c0_7 = arith.constant 0 : index
    %c0_8 = arith.constant 0 : index
    %c0_9 = arith.constant 0 : index
    %11 = vector.load %arg10[%c0_7, %c0_8, %c0_9] : memref<8x8x384xf32, #tpu.memory_space<vmem>>, vector<8x8x384xf32>
    tpu.vector_store %arg10[%c0_7, %c0_8, %c0_9], %10 {strides = array<i32>} : memref<8x8x384xf32, #tpu.memory_space<vmem>>, vector<8x8x384xf32>,
    %c0_10 = arith.constant 0 : index
    %c0_11 = arith.constant 0 : index
    %12 = vector.load %arg3[%c0_10, %c0_11] : memref<128x384xbf16, #tpu.memory_space<vmem>>, vector<128x384xbf16>
    %c0_12 = arith.constant 0 : index
    %c0_13 = arith.constant 0 : index
    %13 = vector.load %arg5[%c0_12, %c0_13] : memref<1x384xf32, #tpu.memory_space<vmem>>, vector<1x384xf32>
    %c8_i32 = arith.constant 8 : i32
    %14 = arith.muli %arg0, %c8_i32 : i32
    %c0_14 = arith.constant 0 : index
    %c0_15 = arith.constant 0 : index
    %15 = vector.load %arg9[%c0_14, %c0_15] : memref<8x128xf32, #tpu.memory_space<vmem>>, vector<8x128xf32>
    %c0_i32_16 = arith.constant 0 : i32
    %16 = arith.index_cast %c0_i32_16 : i32 to index
    %c0_17 = arith.constant 0 : index
    %c0_18 = arith.constant 0 : index
    %17 = vector.load %arg10[%16, %c0_17, %c0_18] : memref<8x8x384xf32, #tpu.memory_space<vmem>>, vector<1x8x384xf32>
    %18 = vector.shape_cast %17 : vector<1x8x384xf32> to vector<8x384xf32>
    %19 = arith.truncf %15 : vector<8x128xf32> to vector<8x128xbf16>
    %cst_19 = arith.constant dense<0.000000e+00> : vector<8x384xf32>
    %20 = tpu.matmul %19, %12, %cst_19 {dimension_numbers = #tpu.dot_dimension_numbers<[1], [0], [0], [1], [0, 0, 1, 1], [], []>} : vector<8x128xbf16>, vector<128x384xbf16>, vector<8x384xf32> -> vector<8x384xf32>
    %21 = vector.broadcast %13 : vector<1x384xf32> to vector<8x384xf32>
    %22 = arith.addf %20, %21 : vector<8x384xf32>
    %23 = vector.extract_strided_slice %18 {offsets = [0, 0], sizes = [8, 128], strides = [1, 1]} : vector<8x384xf32> to vector<8x128xf32>
    %24 = vector.extract_strided_slice %22 {offsets = [0, 0], sizes = [8, 128], strides = [1, 1]} : vector<8x384xf32> to vector<8x128xf32>
    %25 = arith.addf %23, %24 : vector<8x128xf32>
    %26 = arith.negf %25 : vector<8x128xf32>
    %27 = math.exp %26 : vector<8x128xf32>
    %cst_20 = arith.constant 1.000000e+00 : f32
    %28 = vector.broadcast %cst_20 : f32 to vector<8x128xf32>
    %29 = arith.addf %28, %27 : vector<8x128xf32>
    %30 = arith.divf %28, %29 : vector<8x128xf32>
    %31 = vector.extract_strided_slice %18 {offsets = [0, 128], sizes = [8, 128], strides = [1, 1]} : vector<8x384xf32> to vector<8x128xf32>
    %32 = vector.extract_strided_slice %22 {offsets = [0, 128], sizes = [8, 128], strides = [1, 1]} : vector<8x384xf32> to vector<8x128xf32>
    %33 = arith.addf %31, %32 : vector<8x128xf32>
    %34 = arith.negf %33 : vector<8x128xf32>
    %35 = math.exp %34 : vector<8x128xf32>
    %cst_21 = arith.constant 1.000000e+00 : f32
    %36 = vector.broadcast %cst_21 : f32 to vector<8x128xf32>
    %37 = arith.addf %36, %35 : vector<8x128xf32>
    %38 = arith.divf %36, %37 : vector<8x128xf32>
    %39 = vector.extract_strided_slice %18 {offsets = [0, 256], sizes = [8, 128], strides = [1, 1]} : vector<8x384xf32> to vector<8x128xf32>
    %40 = vector.extract_strided_slice %22 {offsets = [0, 256], sizes = [8, 128], strides = [1, 1]} : vector<8x384xf32> to vector<8x128xf32>
    %41 = arith.mulf %30, %40 : vector<8x128xf32>
    %42 = arith.addf %39, %41 : vector<8x128xf32>
    %43 = math.tanh %42 : vector<8x128xf32>
    %cst_22 = arith.constant 1.000000e+00 : f32
    %44 = vector.broadcast %cst_22 : f32 to vector<8x128xf32>
    %45 = arith.subf %44, %38 : vector<8x128xf32>
    %46 = arith.mulf %45, %43 : vector<8x128xf32>
    %47 = arith.mulf %38, %15 : vector<8x128xf32>
    %48 = arith.addf %46, %47 : vector<8x128xf32>
    %49 = arith.addi %14, %c0_i32_16 : i32
    %c8_i32_23 = arith.constant 8 : i32
    %50 = arith.cmpi slt, %49, %c8_i32_23 : i32
    %51 = arith.select %50, %48, %15 : vector<8x128xf32>
    %c1_i32 = arith.constant 1 : i32
    %52 = arith.index_cast %c1_i32 : i32 to index
    %c0_24 = arith.constant 0 : index
    %c0_25 = arith.constant 0 : index
    %53 = vector.load %arg10[%52, %c0_24, %c0_25] : memref<8x8x384xf32, #tpu.memory_space<vmem>>, vector<1x8x384xf32>
    %54 = vector.shape_cast %53 : vector<1x8x384xf32> to vector<8x384xf32>
    %55 = arith.truncf %51 : vector<8x128xf32> to vector<8x128xbf16>
    %cst_26 = arith.constant dense<0.000000e+00> : vector<8x384xf32>
    %56 = tpu.matmul %55, %12, %cst_26 {dimension_numbers = #tpu.dot_dimension_numbers<[1], [0], [0], [1], [0, 0, 1, 1], [], []>} : vector<8x128xbf16>, vector<128x384xbf16>, vector<8x384xf32> -> vector<8x384xf32>
    %57 = vector.broadcast %13 : vector<1x384xf32> to vector<8x384xf32>
    %58 = arith.addf %56, %57 : vector<8x384xf32>
    %59 = vector.extract_strided_slice %54 {offsets = [0, 0], sizes = [8, 128], strides = [1, 1]} : vector<8x384xf32> to vector<8x128xf32>
    %60 = vector.extract_strided_slice %58 {offsets = [0, 0], sizes = [8, 128], strides = [1, 1]} : vector<8x384xf32> to vector<8x128xf32>
    %61 = arith.addf %59, %60 : vector<8x128xf32>
    %62 = arith.negf %61 : vector<8x128xf32>
    %63 = math.exp %62 : vector<8x128xf32>
    %cst_27 = arith.constant 1.000000e+00 : f32
    %64 = vector.broadcast %cst_27 : f32 to vector<8x128xf32>
    %65 = arith.addf %64, %63 : vector<8x128xf32>
    %66 = arith.divf %64, %65 : vector<8x128xf32>
    %67 = vector.extract_strided_slice %54 {offsets = [0, 128], sizes = [8, 128], strides = [1, 1]} : vector<8x384xf32> to vector<8x128xf32>
    %68 = vector.extract_strided_slice %58 {offsets = [0, 128], sizes = [8, 128], strides = [1, 1]} : vector<8x384xf32> to vector<8x128xf32>
    %69 = arith.addf %67, %68 : vector<8x128xf32>
    %70 = arith.negf %69 : vector<8x128xf32>
    %71 = math.exp %70 : vector<8x128xf32>
    %cst_28 = arith.constant 1.000000e+00 : f32
    %72 = vector.broadcast %cst_28 : f32 to vector<8x128xf32>
    %73 = arith.addf %72, %71 : vector<8x128xf32>
    %74 = arith.divf %72, %73 : vector<8x128xf32>
    %75 = vector.extract_strided_slice %54 {offsets = [0, 256], sizes = [8, 128], strides = [1, 1]} : vector<8x384xf32> to vector<8x128xf32>
    %76 = vector.extract_strided_slice %58 {offsets = [0, 256], sizes = [8, 128], strides = [1, 1]} : vector<8x384xf32> to vector<8x128xf32>
    %77 = arith.mulf %66, %76 : vector<8x128xf32>
    %78 = arith.addf %75, %77 : vector<8x128xf32>
    %79 = math.tanh %78 : vector<8x128xf32>
    %cst_29 = arith.constant 1.000000e+00 : f32
    %80 = vector.broadcast %cst_29 : f32 to vector<8x128xf32>
    %81 = arith.subf %80, %74 : vector<8x128xf32>
    %82 = arith.mulf %81, %79 : vector<8x128xf32>
    %83 = arith.mulf %74, %51 : vector<8x128xf32>
    %84 = arith.addf %82, %83 : vector<8x128xf32>
    %85 = arith.addi %14, %c1_i32 : i32
    %c8_i32_30 = arith.constant 8 : i32
    %86 = arith.cmpi slt, %85, %c8_i32_30 : i32
    %87 = arith.select %86, %84, %51 : vector<8x128xf32>
    %c2_i32 = arith.constant 2 : i32
    %88 = arith.index_cast %c2_i32 : i32 to index
    %c0_31 = arith.constant 0 : index
    %c0_32 = arith.constant 0 : index
    %89 = vector.load %arg10[%88, %c0_31, %c0_32] : memref<8x8x384xf32, #tpu.memory_space<vmem>>, vector<1x8x384xf32>
    %90 = vector.shape_cast %89 : vector<1x8x384xf32> to vector<8x384xf32>
    %91 = arith.truncf %87 : vector<8x128xf32> to vector<8x128xbf16>
    %cst_33 = arith.constant dense<0.000000e+00> : vector<8x384xf32>
    %92 = tpu.matmul %91, %12, %cst_33 {dimension_numbers = #tpu.dot_dimension_numbers<[1], [0], [0], [1], [0, 0, 1, 1], [], []>} : vector<8x128xbf16>, vector<128x384xbf16>, vector<8x384xf32> -> vector<8x384xf32>
    %93 = vector.broadcast %13 : vector<1x384xf32> to vector<8x384xf32>
    %94 = arith.addf %92, %93 : vector<8x384xf32>
    %95 = vector.extract_strided_slice %90 {offsets = [0, 0], sizes = [8, 128], strides = [1, 1]} : vector<8x384xf32> to vector<8x128xf32>
    %96 = vector.extract_strided_slice %94 {offsets = [0, 0], sizes = [8, 128], strides = [1, 1]} : vector<8x384xf32> to vector<8x128xf32>
    %97 = arith.addf %95, %96 : vector<8x128xf32>
    %98 = arith.negf %97 : vector<8x128xf32>
    %99 = math.exp %98 : vector<8x128xf32>
    %cst_34 = arith.constant 1.000000e+00 : f32
    %100 = vector.broadcast %cst_34 : f32 to vector<8x128xf32>
    %101 = arith.addf %100, %99 : vector<8x128xf32>
    %102 = arith.divf %100, %101 : vector<8x128xf32>
    %103 = vector.extract_strided_slice %90 {offsets = [0, 128], sizes = [8, 128], strides = [1, 1]} : vector<8x384xf32> to vector<8x128xf32>
    %104 = vector.extract_strided_slice %94 {offsets = [0, 128], sizes = [8, 128], strides = [1, 1]} : vector<8x384xf32> to vector<8x128xf32>
    %105 = arith.addf %103, %104 : vector<8x128xf32>
    %106 = arith.negf %105 : vector<8x128xf32>
    %107 = math.exp %106 : vector<8x128xf32>
    %cst_35 = arith.constant 1.000000e+00 : f32
    %108 = vector.broadcast %cst_35 : f32 to vector<8x128xf32>
    %109 = arith.addf %108, %107 : vector<8x128xf32>
    %110 = arith.divf %108, %109 : vector<8x128xf32>
    %111 = vector.extract_strided_slice %90 {offsets = [0, 256], sizes = [8, 128], strides = [1, 1]} : vector<8x384xf32> to vector<8x128xf32>
    %112 = vector.extract_strided_slice %94 {offsets = [0, 256], sizes = [8, 128], strides = [1, 1]} : vector<8x384xf32> to vector<8x128xf32>
    %113 = arith.mulf %102, %112 : vector<8x128xf32>
    %114 = arith.addf %111, %113 : vector<8x128xf32>
    %115 = math.tanh %114 : vector<8x128xf32>
    %cst_36 = arith.constant 1.000000e+00 : f32
    %116 = vector.broadcast %cst_36 : f32 to vector<8x128xf32>
    %117 = arith.subf %116, %110 : vector<8x128xf32>
    %118 = arith.mulf %117, %115 : vector<8x128xf32>
    %119 = arith.mulf %110, %87 : vector<8x128xf32>
    %120 = arith.addf %118, %119 : vector<8x128xf32>
    %121 = arith.addi %14, %c2_i32 : i32
    %c8_i32_37 = arith.constant 8 : i32
    %122 = arith.cmpi slt, %121, %c8_i32_37 : i32
    %123 = arith.select %122, %120, %87 : vector<8x128xf32>
    %c3_i32 = arith.constant 3 : i32
    %124 = arith.index_cast %c3_i32 : i32 to index
    %c0_38 = arith.constant 0 : index
    %c0_39 = arith.constant 0 : index
    %125 = vector.load %arg10[%124, %c0_38, %c0_39] : memref<8x8x384xf32, #tpu.memory_space<vmem>>, vector<1x8x384xf32>
    %126 = vector.shape_cast %125 : vector<1x8x384xf32> to vector<8x384xf32>
    %127 = arith.truncf %123 : vector<8x128xf32> to vector<8x128xbf16>
    %cst_40 = arith.constant dense<0.000000e+00> : vector<8x384xf32>
    %128 = tpu.matmul %127, %12, %cst_40 {dimension_numbers = #tpu.dot_dimension_numbers<[1], [0], [0], [1], [0, 0, 1, 1], [], []>} : vector<8x128xbf16>, vector<128x384xbf16>, vector<8x384xf32> -> vector<8x384xf32>
    %129 = vector.broadcast %13 : vector<1x384xf32> to vector<8x384xf32>
    %130 = arith.addf %128, %129 : vector<8x384xf32>
    %131 = vector.extract_strided_slice %126 {offsets = [0, 0], sizes = [8, 128], strides = [1, 1]} : vector<8x384xf32> to vector<8x128xf32>
    %132 = vector.extract_strided_slice %130 {offsets = [0, 0], sizes = [8, 128], strides = [1, 1]} : vector<8x384xf32> to vector<8x128xf32>
    %133 = arith.addf %131, %132 : vector<8x128xf32>
    %134 = arith.negf %133 : vector<8x128xf32>
    %135 = math.exp %134 : vector<8x128xf32>
    %cst_41 = arith.constant 1.000000e+00 : f32
    %136 = vector.broadcast %cst_41 : f32 to vector<8x128xf32>
    %137 = arith.addf %136, %135 : vector<8x128xf32>
    %138 = arith.divf %136, %137 : vector<8x128xf32>
    %139 = vector.extract_strided_slice %126 {offsets = [0, 128], sizes = [8, 128], strides = [1, 1]} : vector<8x384xf32> to vector<8x128xf32>
    %140 = vector.extract_strided_slice %130 {offsets = [0, 128], sizes = [8, 128], strides = [1, 1]} : vector<8x384xf32> to vector<8x128xf32>
    %141 = arith.addf %139, %140 : vector<8x128xf32>
    %142 = arith.negf %141 : vector<8x128xf32>
    %143 = math.exp %142 : vector<8x128xf32>
    %cst_42 = arith.constant 1.000000e+00 : f32
    %144 = vector.broadcast %cst_42 : f32 to vector<8x128xf32>
    %145 = arith.addf %144, %143 : vector<8x128xf32>
    %146 = arith.divf %144, %145 : vector<8x128xf32>
    %147 = vector.extract_strided_slice %126 {offsets = [0, 256], sizes = [8, 128], strides = [1, 1]} : vector<8x384xf32> to vector<8x128xf32>
    %148 = vector.extract_strided_slice %130 {offsets = [0, 256], sizes = [8, 128], strides = [1, 1]} : vector<8x384xf32> to vector<8x128xf32>
    %149 = arith.mulf %138, %148 : vector<8x128xf32>
    %150 = arith.addf %147, %149 : vector<8x128xf32>
    %151 = math.tanh %150 : vector<8x128xf32>
    %cst_43 = arith.constant 1.000000e+00 : f32
    %152 = vector.broadcast %cst_43 : f32 to vector<8x128xf32>
    %153 = arith.subf %152, %146 : vector<8x128xf32>
    %154 = arith.mulf %153, %151 : vector<8x128xf32>
    %155 = arith.mulf %146, %123 : vector<8x128xf32>
    %156 = arith.addf %154, %155 : vector<8x128xf32>
    %157 = arith.addi %14, %c3_i32 : i32
    %c8_i32_44 = arith.constant 8 : i32
    %158 = arith.cmpi slt, %157, %c8_i32_44 : i32
    %159 = arith.select %158, %156, %123 : vector<8x128xf32>
    %c4_i32 = arith.constant 4 : i32
    %160 = arith.index_cast %c4_i32 : i32 to index
    %c0_45 = arith.constant 0 : index
    %c0_46 = arith.constant 0 : index
    %161 = vector.load %arg10[%160, %c0_45, %c0_46] : memref<8x8x384xf32, #tpu.memory_space<vmem>>, vector<1x8x384xf32>
    %162 = vector.shape_cast %161 : vector<1x8x384xf32> to vector<8x384xf32>
    %163 = arith.truncf %159 : vector<8x128xf32> to vector<8x128xbf16>
    %cst_47 = arith.constant dense<0.000000e+00> : vector<8x384xf32>
    %164 = tpu.matmul %163, %12, %cst_47 {dimension_numbers = #tpu.dot_dimension_numbers<[1], [0], [0], [1], [0, 0, 1, 1], [], []>} : vector<8x128xbf16>, vector<128x384xbf16>, vector<8x384xf32> -> vector<8x384xf32>
    %165 = vector.broadcast %13 : vector<1x384xf32> to vector<8x384xf32>
    %166 = arith.addf %164, %165 : vector<8x384xf32>
    %167 = vector.extract_strided_slice %162 {offsets = [0, 0], sizes = [8, 128], strides = [1, 1]} : vector<8x384xf32> to vector<8x128xf32>
    %168 = vector.extract_strided_slice %166 {offsets = [0, 0], sizes = [8, 128], strides = [1, 1]} : vector<8x384xf32> to vector<8x128xf32>
    %169 = arith.addf %167, %168 : vector<8x128xf32>
    %170 = arith.negf %169 : vector<8x128xf32>
    %171 = math.exp %170 : vector<8x128xf32>
    %cst_48 = arith.constant 1.000000e+00 : f32
    %172 = vector.broadcast %cst_48 : f32 to vector<8x128xf32>
    %173 = arith.addf %172, %171 : vector<8x128xf32>
    %174 = arith.divf %172, %173 : vector<8x128xf32>
    %175 = vector.extract_strided_slice %162 {offsets = [0, 128], sizes = [8, 128], strides = [1, 1]} : vector<8x384xf32> to vector<8x128xf32>
    %176 = vector.extract_strided_slice %166 {offsets = [0, 128], sizes = [8, 128], strides = [1, 1]} : vector<8x384xf32> to vector<8x128xf32>
    %177 = arith.addf %175, %176 : vector<8x128xf32>
    %178 = arith.negf %177 : vector<8x128xf32>
    %179 = math.exp %178 : vector<8x128xf32>
    %cst_49 = arith.constant 1.000000e+00 : f32
    %180 = vector.broadcast %cst_49 : f32 to vector<8x128xf32>
    %181 = arith.addf %180, %179 : vector<8x128xf32>
    %182 = arith.divf %180, %181 : vector<8x128xf32>
    %183 = vector.extract_strided_slice %162 {offsets = [0, 256], sizes = [8, 128], strides = [1, 1]} : vector<8x384xf32> to vector<8x128xf32>
    %184 = vector.extract_strided_slice %166 {offsets = [0, 256], sizes = [8, 128], strides = [1, 1]} : vector<8x384xf32> to vector<8x128xf32>
    %185 = arith.mulf %174, %184 : vector<8x128xf32>
    %186 = arith.addf %183, %185 : vector<8x128xf32>
    %187 = math.tanh %186 : vector<8x128xf32>
    %cst_50 = arith.constant 1.000000e+00 : f32
    %188 = vector.broadcast %cst_50 : f32 to vector<8x128xf32>
    %189 = arith.subf %188, %182 : vector<8x128xf32>
    %190 = arith.mulf %189, %187 : vector<8x128xf32>
    %191 = arith.mulf %182, %159 : vector<8x128xf32>
    %192 = arith.addf %190, %191 : vector<8x128xf32>
    %193 = arith.addi %14, %c4_i32 : i32
    %c8_i32_51 = arith.constant 8 : i32
    %194 = arith.cmpi slt, %193, %c8_i32_51 : i32
    %195 = arith.select %194, %192, %159 : vector<8x128xf32>
    %c5_i32 = arith.constant 5 : i32
    %196 = arith.index_cast %c5_i32 : i32 to index
    %c0_52 = arith.constant 0 : index
    %c0_53 = arith.constant 0 : index
    %197 = vector.load %arg10[%196, %c0_52, %c0_53] : memref<8x8x384xf32, #tpu.memory_space<vmem>>, vector<1x8x384xf32>
    %198 = vector.shape_cast %197 : vector<1x8x384xf32> to vector<8x384xf32>
    %199 = arith.truncf %195 : vector<8x128xf32> to vector<8x128xbf16>
    %cst_54 = arith.constant dense<0.000000e+00> : vector<8x384xf32>
    %200 = tpu.matmul %199, %12, %cst_54 {dimension_numbers = #tpu.dot_dimension_numbers<[1], [0], [0], [1], [0, 0, 1, 1], [], []>} : vector<8x128xbf16>, vector<128x384xbf16>, vector<8x384xf32> -> vector<8x384xf32>
    %201 = vector.broadcast %13 : vector<1x384xf32> to vector<8x384xf32>
    %202 = arith.addf %200, %201 : vector<8x384xf32>
    %203 = vector.extract_strided_slice %198 {offsets = [0, 0], sizes = [8, 128], strides = [1, 1]} : vector<8x384xf32> to vector<8x128xf32>
    %204 = vector.extract_strided_slice %202 {offsets = [0, 0], sizes = [8, 128], strides = [1, 1]} : vector<8x384xf32> to vector<8x128xf32>
    %205 = arith.addf %203, %204 : vector<8x128xf32>
    %206 = arith.negf %205 : vector<8x128xf32>
    %207 = math.exp %206 : vector<8x128xf32>
    %cst_55 = arith.constant 1.000000e+00 : f32
    %208 = vector.broadcast %cst_55 : f32 to vector<8x128xf32>
    %209 = arith.addf %208, %207 : vector<8x128xf32>
    %210 = arith.divf %208, %209 : vector<8x128xf32>
    %211 = vector.extract_strided_slice %198 {offsets = [0, 128], sizes = [8, 128], strides = [1, 1]} : vector<8x384xf32> to vector<8x128xf32>
    %212 = vector.extract_strided_slice %202 {offsets = [0, 128], sizes = [8, 128], strides = [1, 1]} : vector<8x384xf32> to vector<8x128xf32>
    %213 = arith.addf %211, %212 : vector<8x128xf32>
    %214 = arith.negf %213 : vector<8x128xf32>
    %215 = math.exp %214 : vector<8x128xf32>
    %cst_56 = arith.constant 1.000000e+00 : f32
    %216 = vector.broadcast %cst_56 : f32 to vector<8x128xf32>
    %217 = arith.addf %216, %215 : vector<8x128xf32>
    %218 = arith.divf %216, %217 : vector<8x128xf32>
    %219 = vector.extract_strided_slice %198 {offsets = [0, 256], sizes = [8, 128], strides = [1, 1]} : vector<8x384xf32> to vector<8x128xf32>
    %220 = vector.extract_strided_slice %202 {offsets = [0, 256], sizes = [8, 128], strides = [1, 1]} : vector<8x384xf32> to vector<8x128xf32>
    %221 = arith.mulf %210, %220 : vector<8x128xf32>
    %222 = arith.addf %219, %221 : vector<8x128xf32>
    %223 = math.tanh %222 : vector<8x128xf32>
    %cst_57 = arith.constant 1.000000e+00 : f32
    %224 = vector.broadcast %cst_57 : f32 to vector<8x128xf32>
    %225 = arith.subf %224, %218 : vector<8x128xf32>
    %226 = arith.mulf %225, %223 : vector<8x128xf32>
    %227 = arith.mulf %218, %195 : vector<8x128xf32>
    %228 = arith.addf %226, %227 : vector<8x128xf32>
    %229 = arith.addi %14, %c5_i32 : i32
    %c8_i32_58 = arith.constant 8 : i32
    %230 = arith.cmpi slt, %229, %c8_i32_58 : i32
    %231 = arith.select %230, %228, %195 : vector<8x128xf32>
    %c6_i32 = arith.constant 6 : i32
    %232 = arith.index_cast %c6_i32 : i32 to index
    %c0_59 = arith.constant 0 : index
    %c0_60 = arith.constant 0 : index
    %233 = vector.load %arg10[%232, %c0_59, %c0_60] : memref<8x8x384xf32, #tpu.memory_space<vmem>>, vector<1x8x384xf32>
    %234 = vector.shape_cast %233 : vector<1x8x384xf32> to vector<8x384xf32>
    %235 = arith.truncf %231 : vector<8x128xf32> to vector<8x128xbf16>
    %cst_61 = arith.constant dense<0.000000e+00> : vector<8x384xf32>
    %236 = tpu.matmul %235, %12, %cst_61 {dimension_numbers = #tpu.dot_dimension_numbers<[1], [0], [0], [1], [0, 0, 1, 1], [], []>} : vector<8x128xbf16>, vector<128x384xbf16>, vector<8x384xf32> -> vector<8x384xf32>
    %237 = vector.broadcast %13 : vector<1x384xf32> to vector<8x384xf32>
    %238 = arith.addf %236, %237 : vector<8x384xf32>
    %239 = vector.extract_strided_slice %234 {offsets = [0, 0], sizes = [8, 128], strides = [1, 1]} : vector<8x384xf32> to vector<8x128xf32>
    %240 = vector.extract_strided_slice %238 {offsets = [0, 0], sizes = [8, 128], strides = [1, 1]} : vector<8x384xf32> to vector<8x128xf32>
    %241 = arith.addf %239, %240 : vector<8x128xf32>
    %242 = arith.negf %241 : vector<8x128xf32>
    %243 = math.exp %242 : vector<8x128xf32>
    %cst_62 = arith.constant 1.000000e+00 : f32
    %244 = vector.broadcast %cst_62 : f32 to vector<8x128xf32>
    %245 = arith.addf %244, %243 : vector<8x128xf32>
    %246 = arith.divf %244, %245 : vector<8x128xf32>
    %247 = vector.extract_strided_slice %234 {offsets = [0, 128], sizes = [8, 128], strides = [1, 1]} : vector<8x384xf32> to vector<8x128xf32>
    %248 = vector.extract_strided_slice %238 {offsets = [0, 128], sizes = [8, 128], strides = [1, 1]} : vector<8x384xf32> to vector<8x128xf32>
    %249 = arith.addf %247, %248 : vector<8x128xf32>
    %250 = arith.negf %249 : vector<8x128xf32>
    %251 = math.exp %250 : vector<8x128xf32>
    %cst_63 = arith.constant 1.000000e+00 : f32
    %252 = vector.broadcast %cst_63 : f32 to vector<8x128xf32>
    %253 = arith.addf %252, %251 : vector<8x128xf32>
    %254 = arith.divf %252, %253 : vector<8x128xf32>
    %255 = vector.extract_strided_slice %234 {offsets = [0, 256], sizes = [8, 128], strides = [1, 1]} : vector<8x384xf32> to vector<8x128xf32>
    %256 = vector.extract_strided_slice %238 {offsets = [0, 256], sizes = [8, 128], strides = [1, 1]} : vector<8x384xf32> to vector<8x128xf32>
    %257 = arith.mulf %246, %256 : vector<8x128xf32>
    %258 = arith.addf %255, %257 : vector<8x128xf32>
    %259 = math.tanh %258 : vector<8x128xf32>
    %cst_64 = arith.constant 1.000000e+00 : f32
    %260 = vector.broadcast %cst_64 : f32 to vector<8x128xf32>
    %261 = arith.subf %260, %254 : vector<8x128xf32>
    %262 = arith.mulf %261, %259 : vector<8x128xf32>
    %263 = arith.mulf %254, %231 : vector<8x128xf32>
    %264 = arith.addf %262, %263 : vector<8x128xf32>
    %265 = arith.addi %14, %c6_i32 : i32
    %c8_i32_65 = arith.constant 8 : i32
    %266 = arith.cmpi slt, %265, %c8_i32_65 : i32
    %267 = arith.select %266, %264, %231 : vector<8x128xf32>
    %c7_i32 = arith.constant 7 : i32
    %268 = arith.index_cast %c7_i32 : i32 to index
    %c0_66 = arith.constant 0 : index
    %c0_67 = arith.constant 0 : index
    %269 = vector.load %arg10[%268, %c0_66, %c0_67] : memref<8x8x384xf32, #tpu.memory_space<vmem>>, vector<1x8x384xf32>
    %270 = vector.shape_cast %269 : vector<1x8x384xf32> to vector<8x384xf32>
    %271 = arith.truncf %267 : vector<8x128xf32> to vector<8x128xbf16>
    %cst_68 = arith.constant dense<0.000000e+00> : vector<8x384xf32>
    %272 = tpu.matmul %271, %12, %cst_68 {dimension_numbers = #tpu.dot_dimension_numbers<[1], [0], [0], [1], [0, 0, 1, 1], [], []>} : vector<8x128xbf16>, vector<128x384xbf16>, vector<8x384xf32> -> vector<8x384xf32>
    %273 = vector.broadcast %13 : vector<1x384xf32> to vector<8x384xf32>
    %274 = arith.addf %272, %273 : vector<8x384xf32>
    %275 = vector.extract_strided_slice %270 {offsets = [0, 0], sizes = [8, 128], strides = [1, 1]} : vector<8x384xf32> to vector<8x128xf32>
    %276 = vector.extract_strided_slice %274 {offsets = [0, 0], sizes = [8, 128], strides = [1, 1]} : vector<8x384xf32> to vector<8x128xf32>
    %277 = arith.addf %275, %276 : vector<8x128xf32>
    %278 = arith.negf %277 : vector<8x128xf32>
    %279 = math.exp %278 : vector<8x128xf32>
    %cst_69 = arith.constant 1.000000e+00 : f32
    %280 = vector.broadcast %cst_69 : f32 to vector<8x128xf32>
    %281 = arith.addf %280, %279 : vector<8x128xf32>
    %282 = arith.divf %280, %281 : vector<8x128xf32>
    %283 = vector.extract_strided_slice %270 {offsets = [0, 128], sizes = [8, 128], strides = [1, 1]} : vector<8x384xf32> to vector<8x128xf32>
    %284 = vector.extract_strided_slice %274 {offsets = [0, 128], sizes = [8, 128], strides = [1, 1]} : vector<8x384xf32> to vector<8x128xf32>
    %285 = arith.addf %283, %284 : vector<8x128xf32>
    %286 = arith.negf %285 : vector<8x128xf32>
    %287 = math.exp %286 : vector<8x128xf32>
    %cst_70 = arith.constant 1.000000e+00 : f32
    %288 = vector.broadcast %cst_70 : f32 to vector<8x128xf32>
    %289 = arith.addf %288, %287 : vector<8x128xf32>
    %290 = arith.divf %288, %289 : vector<8x128xf32>
    %291 = vector.extract_strided_slice %270 {offsets = [0, 256], sizes = [8, 128], strides = [1, 1]} : vector<8x384xf32> to vector<8x128xf32>
    %292 = vector.extract_strided_slice %274 {offsets = [0, 256], sizes = [8, 128], strides = [1, 1]} : vector<8x384xf32> to vector<8x128xf32>
    %293 = arith.mulf %282, %292 : vector<8x128xf32>
    %294 = arith.addf %291, %293 : vector<8x128xf32>
    %295 = math.tanh %294 : vector<8x128xf32>
    %cst_71 = arith.constant 1.000000e+00 : f32
    %296 = vector.broadcast %cst_71 : f32 to vector<8x128xf32>
    %297 = arith.subf %296, %290 : vector<8x128xf32>
    %298 = arith.mulf %297, %295 : vector<8x128xf32>
    %299 = arith.mulf %290, %267 : vector<8x128xf32>
    %300 = arith.addf %298, %299 : vector<8x128xf32>
    %301 = arith.addi %14, %c7_i32 : i32
    %c8_i32_72 = arith.constant 8 : i32
    %302 = arith.cmpi slt, %301, %c8_i32_72 : i32
    %303 = arith.select %302, %300, %267 : vector<8x128xf32>
    %c8_i32_73 = arith.constant 8 : i32
    %c0_74 = arith.constant 0 : index
    %c0_75 = arith.constant 0 : index
    %304 = vector.load %arg9[%c0_74, %c0_75] : memref<8x128xf32, #tpu.memory_space<vmem>>, vector<8x128xf32>
    tpu.vector_store %arg9[%c0_74, %c0_75], %303 {strides = array<i32>} : memref<8x128xf32, #tpu.memory_space<vmem>>, vector<8x128xf32>,
    %c0_i32_76 = arith.constant 0 : i32
    %305 = arith.cmpi eq, %arg0, %c0_i32_76 : i32
    %306 = arith.extui %305 : i1 to i32
    %c0_i32_77 = arith.constant 0 : i32
    %307 = arith.cmpi ne, %306, %c0_i32_77 : i32
    scf.if %307 {
      %308 = arith.truncf %303 : vector<8x128xf32> to vector<8x128xbf16>
      %c0_78 = arith.constant 0 : index
      %c0_79 = arith.constant 0 : index
      %309 = vector.load %arg6[%c0_78, %c0_79] : memref<128x128xbf16, #tpu.memory_space<vmem>>, vector<128x128xbf16>
      %cst_80 = arith.constant dense<0.000000e+00> : vector<8x128xf32>
      %310 = tpu.matmul %308, %309, %cst_80 {dimension_numbers = #tpu.dot_dimension_numbers<[1], [0], [0], [1], [0, 0, 1, 1], [], []>} : vector<8x128xbf16>, vector<128x128xbf16>, vector<8x128xf32> -> vector<8x128xf32>
      %c0_81 = arith.constant 0 : index
      %c0_82 = arith.constant 0 : index
      %311 = vector.load %arg7[%c0_81, %c0_82] : memref<1x128xf32, #tpu.memory_space<vmem>>, vector<1x128xf32>
      %312 = vector.broadcast %311 : vector<1x128xf32> to vector<8x128xf32>
      %313 = arith.addf %310, %312 : vector<8x128xf32>
      %c0_83 = arith.constant 0 : index
      %c0_84 = arith.constant 0 : index
      %314 = vector.load %arg8[%c0_83, %c0_84] : memref<8x128xf32, #tpu.memory_space<vmem>>, vector<8x128xf32>
      tpu.vector_store %arg8[%c0_83, %c0_84], %313 {strides = array<i32>} : memref<8x128xf32, #tpu.memory_space<vmem>>, vector<8x128xf32>,
    } else {
    }
    return
  }
  func.func @transform_0(%arg0: i32) -> (i32, i32, i32) {
    %c0_i32 = arith.constant 0 : i32
    %c0_i32_0 = arith.constant 0 : i32
    %c0_i32_1 = arith.constant 0 : i32
    return %arg0, %c0_i32, %c0_i32_0 : i32, i32, i32
  }
  func.func @transform_1(%arg0: i32) -> (i32, i32) {
    %c0_i32 = arith.constant 0 : i32
    %c0_i32_0 = arith.constant 0 : i32
    %c0_i32_1 = arith.constant 0 : i32
    return %c0_i32, %c0_i32_0 : i32, i32
  }
  func.func @transform_2(%arg0: i32) -> (i32, i32) {
    %c0_i32 = arith.constant 0 : i32
    %c0_i32_0 = arith.constant 0 : i32
    %c0_i32_1 = arith.constant 0 : i32
    return %c0_i32, %c0_i32_0 : i32, i32
  }
  func.func @transform_3(%arg0: i32) -> (i32, i32) {
    %c0_i32 = arith.constant 0 : i32
    %c0_i32_0 = arith.constant 0 : i32
    %c0_i32_1 = arith.constant 0 : i32
    return %c0_i32, %c0_i32_0 : i32, i32
  }
  func.func @transform_4(%arg0: i32) -> (i32, i32) {
    %c0_i32 = arith.constant 0 : i32
    %c0_i32_0 = arith.constant 0 : i32
    %c0_i32_1 = arith.constant 0 : i32
    return %c0_i32, %c0_i32_0 : i32, i32
  }
  func.func @transform_5(%arg0: i32) -> (i32, i32) {
    %c0_i32 = arith.constant 0 : i32
    %c0_i32_0 = arith.constant 0 : i32
    %c0_i32_1 = arith.constant 0 : i32
    return %c0_i32, %c0_i32_0 : i32, i32
  }
  func.func @transform_6(%arg0: i32) -> (i32, i32) {
    %c0_i32 = arith.constant 0 : i32
    %c0_i32_0 = arith.constant 0 : i32
    %c0_i32_1 = arith.constant 0 : i32
    return %c0_i32, %c0_i32_0 : i32, i32
  }
  func.func @transform_7(%arg0: i32) -> (i32, i32) {
    %c0_i32 = arith.constant 0 : i32
    %c0_i32_0 = arith.constant 0 : i32
    %c0_i32_1 = arith.constant 0 : i32
    return %c0_i32, %c0_i32_0 : i32, i32
  }
}

module attributes {stable_mosaic.version = 11 : i64} {
  func.func @_fused_encoder_kernel(%arg0: i32, %arg1: memref<2x64x4xbf16, #tpu.memory_space<vmem>>, %arg2: memref<4x128xbf16, #tpu.memory_space<vmem>>, %arg3: memref<1x128xf32, #tpu.memory_space<vmem>>, %arg4: memref<2x128x128xbf16, #tpu.memory_space<vmem>>, %arg5: memref<1x128xf32, #tpu.memory_space<vmem>>, %arg6: memref<64x128xbf16, #tpu.memory_space<vmem>>) attributes {dimension_semantics = [#tpu.dimension_semantics<parallel>], iteration_bounds = array<i64: 1>, scalar_prefetch = 0 : i64, scratch_operands = 0 : i64, tpu.core_type = #tpu.core_type<tc>, window_params = [{transform_indices = @transform_0, window_bounds = array<i64: 2, 64, 4>}, {pipeline_mode = #tpu.pipeline_mode<synchronous>, transform_indices = @transform_1, window_bounds = array<i64: 4, 128>}, {pipeline_mode = #tpu.pipeline_mode<synchronous>, transform_indices = @transform_2, window_bounds = array<i64: 1, 128>}, {pipeline_mode = #tpu.pipeline_mode<synchronous>, transform_indices = @transform_3, window_bounds = array<i64: 2, 128, 128>}, {pipeline_mode = #tpu.pipeline_mode<synchronous>, transform_indices = @transform_4, window_bounds = array<i64: 1, 128>}, {transform_indices = @transform_5, window_bounds = array<i64: 64, 128>}]} {
    %c0 = arith.constant 0 : index
    %c0_0 = arith.constant 0 : index
    %0 = vector.load %arg2[%c0, %c0_0] : memref<4x128xbf16, #tpu.memory_space<vmem>>, vector<4x128xbf16>
    %c0_1 = arith.constant 0 : index
    %c0_2 = arith.constant 0 : index
    %1 = vector.load %arg3[%c0_1, %c0_2] : memref<1x128xf32, #tpu.memory_space<vmem>>, vector<1x128xf32>
    %c0_3 = arith.constant 0 : index
    %c0_4 = arith.constant 0 : index
    %c0_5 = arith.constant 0 : index
    %2 = vector.load %arg1[%c0_3, %c0_4, %c0_5] : memref<2x64x4xbf16, #tpu.memory_space<vmem>>, vector<1x64x4xbf16>
    %3 = vector.shape_cast %2 : vector<1x64x4xbf16> to vector<64x4xbf16>
    %cst = arith.constant dense<0.000000e+00> : vector<64x128xf32>
    %4 = tpu.matmul %3, %0, %cst {dimension_numbers = #tpu.dot_dimension_numbers<[1], [0], [0], [1], [0, 0, 1, 1], [], []>} : vector<64x4xbf16>, vector<4x128xbf16>, vector<64x128xf32> -> vector<64x128xf32>
    %5 = vector.broadcast %1 : vector<1x128xf32> to vector<64x128xf32>
    %6 = arith.addf %4, %5 : vector<64x128xf32>
    %cst_6 = arith.constant 0.000000e+00 : f32
    %7 = vector.broadcast %cst_6 : f32 to vector<64x128xf32>
    %8 = arith.maximumf %6, %7 : vector<64x128xf32>
    %9 = arith.truncf %8 : vector<64x128xf32> to vector<64x128xbf16>
    %c0_7 = arith.constant 0 : index
    %c0_8 = arith.constant 0 : index
    %c0_9 = arith.constant 0 : index
    %10 = vector.load %arg4[%c0_7, %c0_8, %c0_9] : memref<2x128x128xbf16, #tpu.memory_space<vmem>>, vector<1x128x128xbf16>
    %11 = vector.shape_cast %10 : vector<1x128x128xbf16> to vector<128x128xbf16>
    %cst_10 = arith.constant dense<0.000000e+00> : vector<64x128xf32>
    %12 = tpu.matmul %9, %11, %cst_10 {dimension_numbers = #tpu.dot_dimension_numbers<[1], [0], [0], [1], [0, 0, 1, 1], [], []>} : vector<64x128xbf16>, vector<128x128xbf16>, vector<64x128xf32> -> vector<64x128xf32>
    %c1 = arith.constant 1 : index
    %c0_11 = arith.constant 0 : index
    %c0_12 = arith.constant 0 : index
    %13 = vector.load %arg1[%c1, %c0_11, %c0_12] : memref<2x64x4xbf16, #tpu.memory_space<vmem>>, vector<1x64x4xbf16>
    %14 = vector.shape_cast %13 : vector<1x64x4xbf16> to vector<64x4xbf16>
    %cst_13 = arith.constant dense<0.000000e+00> : vector<64x128xf32>
    %15 = tpu.matmul %14, %0, %cst_13 {dimension_numbers = #tpu.dot_dimension_numbers<[1], [0], [0], [1], [0, 0, 1, 1], [], []>} : vector<64x4xbf16>, vector<4x128xbf16>, vector<64x128xf32> -> vector<64x128xf32>
    %16 = vector.broadcast %1 : vector<1x128xf32> to vector<64x128xf32>
    %17 = arith.addf %15, %16 : vector<64x128xf32>
    %cst_14 = arith.constant 0.000000e+00 : f32
    %18 = vector.broadcast %cst_14 : f32 to vector<64x128xf32>
    %19 = arith.maximumf %17, %18 : vector<64x128xf32>
    %20 = arith.truncf %19 : vector<64x128xf32> to vector<64x128xbf16>
    %c1_15 = arith.constant 1 : index
    %c0_16 = arith.constant 0 : index
    %c0_17 = arith.constant 0 : index
    %21 = vector.load %arg4[%c1_15, %c0_16, %c0_17] : memref<2x128x128xbf16, #tpu.memory_space<vmem>>, vector<1x128x128xbf16>
    %22 = vector.shape_cast %21 : vector<1x128x128xbf16> to vector<128x128xbf16>
    %cst_18 = arith.constant dense<0.000000e+00> : vector<64x128xf32>
    %23 = tpu.matmul %20, %22, %cst_18 {dimension_numbers = #tpu.dot_dimension_numbers<[1], [0], [0], [1], [0, 0, 1, 1], [], []>} : vector<64x128xbf16>, vector<128x128xbf16>, vector<64x128xf32> -> vector<64x128xf32>
    %24 = arith.addf %12, %23 : vector<64x128xf32>
    %c0_19 = arith.constant 0 : index
    %c0_20 = arith.constant 0 : index
    %25 = vector.load %arg5[%c0_19, %c0_20] : memref<1x128xf32, #tpu.memory_space<vmem>>, vector<1x128xf32>
    %26 = vector.broadcast %25 : vector<1x128xf32> to vector<64x128xf32>
    %27 = arith.addf %24, %26 : vector<64x128xf32>
    %cst_21 = arith.constant 0.000000e+00 : f32
    %28 = vector.broadcast %cst_21 : f32 to vector<64x128xf32>
    %29 = arith.maximumf %27, %28 : vector<64x128xf32>
    %30 = arith.truncf %29 : vector<64x128xf32> to vector<64x128xbf16>
    %c0_22 = arith.constant 0 : index
    %c0_23 = arith.constant 0 : index
    %31 = vector.load %arg6[%c0_22, %c0_23] : memref<64x128xbf16, #tpu.memory_space<vmem>>, vector<64x128xbf16>
    tpu.vector_store %arg6[%c0_22, %c0_23], %30 {strides = array<i32>} : memref<64x128xbf16, #tpu.memory_space<vmem>>, vector<64x128xbf16>,
    return
  }
  func.func @transform_0(%arg0: i32) -> (i32, i32, i32) {
    %c0_i32 = arith.constant 0 : i32
    %c0_i32_0 = arith.constant 0 : i32
    %c0_i32_1 = arith.constant 0 : i32
    return %c0_i32, %arg0, %c0_i32_0 : i32, i32, i32
  }
  func.func @transform_1(%arg0: i32) -> (i32, i32) {
    %c0_i32 = arith.constant 0 : i32
    %c0_i32_0 = arith.constant 0 : i32
    %c0_i32_1 = arith.constant 0 : i32
    return %c0_i32, %c0_i32_0 : i32, i32
  }
  func.func @transform_2(%arg0: i32) -> (i32, i32) {
    %c0_i32 = arith.constant 0 : i32
    %c0_i32_0 = arith.constant 0 : i32
    %c0_i32_1 = arith.constant 0 : i32
    return %c0_i32, %c0_i32_0 : i32, i32
  }
  func.func @transform_3(%arg0: i32) -> (i32, i32, i32) {
    %c0_i32 = arith.constant 0 : i32
    %c0_i32_0 = arith.constant 0 : i32
    %c0_i32_1 = arith.constant 0 : i32
    %c0_i32_2 = arith.constant 0 : i32
    return %c0_i32, %c0_i32_0, %c0_i32_1 : i32, i32, i32
  }
  func.func @transform_4(%arg0: i32) -> (i32, i32) {
    %c0_i32 = arith.constant 0 : i32
    %c0_i32_0 = arith.constant 0 : i32
    %c0_i32_1 = arith.constant 0 : i32
    return %c0_i32, %c0_i32_0 : i32, i32
  }
  func.func @transform_5(%arg0: i32) -> (i32, i32) {
    %c0_i32 = arith.constant 0 : i32
    %c0_i32_0 = arith.constant 0 : i32
    return %arg0, %c0_i32 : i32, i32
  }
}

</mosaic_0001>

<bundles_post_ra>
// kernel: supervised_forward.2
= control target key start
LH: loop header
LB: loop body
LE: loop exit
PB: predicated region body
PF: predicated region fallthrough
CT: control target
= control target key end

     0   :  { %vm70_vm0 = vcmask 1041408   ;;  %vm57_vm1 = vcmask 31744   ;;  %s959_s1 = inlined_call_operand.vmem [shape: bf16[4,128], index: 1, kind: input, shape index: {}]   ;;  %s960_s0 = inlined_call_operand.vmem [shape: bf16[2,64,4], index: 0, kind: input, shape index: {}]   ;;  %s961_s3 = inlined_call_operand.vmem [shape: bf16[2,128,128], index: 3, kind: input, shape index: {}]   ;;  %s962_s2 = inlined_call_operand.vmem [shape: f32[1,128], index: 2, kind: input, shape index: {}]   ;;  %s963_s4 = inlined_call_operand.vmem [shape: f32[1,128], index: 4, kind: input, shape index: {}]   ;;  %s964_s5 = inlined_call_operand.vmem [shape: bf16[64,128], index: 5, kind: output, shape index: {}]  }
   0x1   :  { %v21_v0 = vld [vmem:[%s959_s1] sm:$0x3]  ;;  %v806_v4 = vld [vmem:[%s960_s0 + $0x8] sm:$0xff]   ;;  %v808_v6 = vld [vmem:[%s960_s0 + $0x10] sm:$0xff]  }
   0x2   :  { %802 = vmatprep.subr.msk.bf16.mxu0 %vm70_vm0, %v21_v0  ;;  %803 = vmatprep.subr.msk.bf16.mxu1 %vm70_vm0, %v21_v0  ;;  %v72_v1 = vsel %vm70_vm0, %v21_v0, 0  ;;  %v804_v2 = vld [vmem:[%s960_s0] sm:$0xff]   ;;  %v807_v5 = vld [vmem:[%s960_s0 + $0x28] sm:$0xff]   ;;  %v809_v7 = vld [vmem:[%s960_s0 + $0x30] sm:$0xff]  }
   0x3   :  { %727 = vmatpush3.bf16.msra.mxu0 %v72_v1  ;;  %737 = vmatpush3.bf16.msra.mxu1 %v72_v1  ;;  %v805_v3 = vld [vmem:[%s960_s0 + $0x20] sm:$0xff]   ;;  %v810_v8 = vld [vmem:[%s960_s0 + $0x18] sm:$0xff]   ;;  %v814_v12 = vld [vmem:[%s961_s3 + $0x48] sm:$0xff]  }
   0x4   :  { %728 = vmatprep.mubr.msk.bf16.mxu0 %vm57_vm1, %v804_v2  ;;  %738 = vmatprep.mubr.msk.bf16.mxu1 %vm57_vm1, %v805_v3  ;;  %v811_v9 = vld [vmem:[%s960_s0 + $0x38] sm:$0xff]   ;;  %v812_v10 = vld [vmem:[%s961_s3 + $0x40] sm:$0xff]   ;;  %v815_v13 = vld [vmem:[%s961_s3 + $0x8] sm:$0xff]  }
   0x5   :  { %v813_v11 = vld [vmem:[%s961_s3] sm:$0xff]   ;;  %746 = vmatprep.subr.bf16.mxu1 %v812_v10  ;;  %v816_v14 = vld [vmem:[%s961_s3 + $0x50] sm:$0xff]   ;;  %v818_v16 = vld [vmem:[%s961_s3 + $0x58] sm:$0xff]  }
   0x6   :  { %729 = vmatmul.mubr.msk.bf16.vlgmr.msra.gmra.mrb[0].mxu0 %vm57_vm1, %v806_v4  ;;  %739 = vmatmul.mubr.msk.bf16.vlgmr.msra.gmra.mrb[0].mxu1 %vm57_vm1, %v807_v5  ;;  %v817_v15 = vld [vmem:[%s961_s3 + $0x10] sm:$0xff]   ;;  %v819_v17 = vld [vmem:[%s961_s3 + $0x18] sm:$0xff]   ;;  %v820_v18 = vld [vmem:[%s961_s3 + $0x60] sm:$0xff]  }
   0x7   :  { %732 = vmatprep.mubr.msk.bf16.mxu0 %vm57_vm1, %v808_v6  ;;  %742 = vmatprep.mubr.msk.bf16.mxu1 %vm57_vm1, %v809_v7  ;;  %v821_v19 = vld [vmem:[%s961_s3 + $0x20] sm:$0xff]   ;;  %v822_v20 = vld [vmem:[%s961_s3 + $0x68] sm:$0xff]   ;;  %v824_v22 = vld [vmem:[%s961_s3 + $0x70] sm:$0xff]  }
   0x8   :  { %770 = vmatprep.subr.bf16.mxu0 %v813_v11  ;;  %747 = vmatpush3.bf16.msra.mxu1 %v812_v10  ;;  %v823_v21 = vld [vmem:[%s961_s3 + $0x28] sm:$0xff]   ;;  %v825_v23 = vld [vmem:[%s961_s3 + $0x30] sm:$0xff]   ;;  %v826_v24 = vld [vmem:[%s961_s3 + $0x78] sm:$0xff]  }
   0x9   :  { %748 = vmatprep.subr.bf16.mxu1 %v814_v12  ;;  %771 = vmatpush3.bf16.msra.mxu0 %v813_v11  ;;  %v827_v25 = vld [vmem:[%s961_s3 + $0x38] sm:$0xff]   ;;  %v595_v26 = vld [vmem:[%s962_s2] ss:$0 sm:$0xff] }
   0xa   :  { %772 = vmatprep.subr.bf16.mxu0 %v815_v13 }
   0xc   :  { %749 = vmatpush3.bf16.msra.mxu1 %v814_v12 }
   0xd   :  { %750 = vmatprep.subr.bf16.mxu1 %v816_v14  ;;  %773 = vmatpush3.bf16.msra.mxu0 %v815_v13 }
   0xe   :  { %733 = vmatmul.mubr.msk.bf16.gmra.mrb[4].mxu0 %vm57_vm1, %v810_v8  ;;  %743 = vmatmul.mubr.msk.bf16.gmra.mrb[4].mxu1 %vm57_vm1, %v811_v9 }
   0xf   :  { %774 = vmatprep.subr.bf16.mxu0 %v817_v15 }
  0x10   :  { %751 = vmatpush3.bf16.msra.mxu1 %v816_v14 }
  0x11   :  { %752 = vmatprep.subr.bf16.mxu1 %v818_v16  ;;  %775 = vmatpush3.bf16.msra.mxu0 %v817_v15 }
  0x12   :  { %776 = vmatprep.subr.bf16.mxu0 %v819_v17 }
  0x14   :  { %753 = vmatpush3.bf16.msra.mxu1 %v818_v16 }
  0x15   :  { %754 = vmatprep.subr.bf16.mxu1 %v820_v18  ;;  %777 = vmatpush3.bf16.msra.mxu0 %v819_v17 }
  0x16   :  { %778 = vmatprep.subr.bf16.mxu0 %v821_v19 }
  0x18   :  { %755 = vmatpush3.bf16.msra.mxu1 %v820_v18 }
  0x19   :  { %756 = vmatprep.subr.bf16.mxu1 %v822_v20  ;;  %779 = vmatpush3.bf16.msra.mxu0 %v821_v19 }
  0x1a   :  { %780 = vmatprep.subr.bf16.mxu0 %v823_v21 }
  0x1c   :  { %757 = vmatpush3.bf16.msra.mxu1 %v822_v20 }
  0x1d   :  { %781 = vmatpush3.bf16.msra.mxu0 %v823_v21  ;;  %758 = vmatprep.subr.bf16.mxu1 %v824_v22  ;;  %v652_v21 = vld [vmem:[%s963_s4] ss:$0 sm:$0xff] }
  0x1e   :  { %782 = vmatprep.subr.bf16.mxu0 %v825_v23 }
  0x20   :  { %759 = vmatpush3.bf16.msra.mxu1 %v824_v22 }
  0x21   :  { %783 = vmatpush3.bf16.msra.mxu0 %v825_v23  ;;  %760 = vmatprep.subr.bf16.mxu1 %v826_v24 }
  0x22   :  { %784 = vmatprep.subr.bf16.mxu0 %v827_v25 }
  0x24   :  { %761 = vmatpush3.bf16.msra.mxu1 %v826_v24 }
  0x25   :  { %785 = vmatpush3.bf16.msra.mxu0 %v827_v25 }
  0xd9   :  { %v730_v27 = vpop.f32.mrb[0].mxu0  ;;  %v740_v29 = vpop.f32.mrb[0].mxu1 }
  0xda   :  { %v117_v28 = vadd.f32 %v730_v27, %v595_v26  ;;  %v108_v30 = vpop.f32.mrb[1].mxu0  ;;  %v251_v31 = vadd.f32 %v740_v29, %v595_v26  ;;  %v242_v33 = vpop.f32.mrb[1].mxu1 }
  0xdb   :  { %v109_v32 = vadd.f32 %v595_v26, %v108_v30  ;;  %v731_v34 = vpop.f32.mrb[2].mxu0  ;;  %v243_v35 = vadd.f32 %v595_v26, %v242_v33  ;;  %v741_v37 = vpop.f32.mrb[2].mxu1 }
  0xdc   :  { %v120_v36 = vadd.f32 %v731_v34, %v595_v26  ;;  %v111_v38 = vpop.f32.mrb[3].mxu0  ;;  %v254_v39 = vadd.f32 %v741_v37, %v595_v26  ;;  %v245_v41 = vpop.f32.mrb[3].mxu1  ;;  %v141_v42 = vmax.f32 %v117_v28, 0.0  ;;  %v275_v45 = vmax.f32 %v251_v31, 0.0 }
  0xdd   :  { %v112_v40 = vadd.f32 %v595_v26, %v111_v38  ;;  %v246_v44 = vadd.f32 %v595_v26, %v245_v41  ;;  %v139_v46 = vmax.f32 %v109_v32, 0.0  ;;  %v273_v49 = vmax.f32 %v243_v35, 0.0 }
  0xde   :  { %v142_v43 = vmax.f32 %v120_v36, 0.0  ;;  %v276_v47 = vmax.f32 %v254_v39, 0.0 }
  0xdf   :  { %v140_v48 = vmax.f32 %v112_v40, 0.0  ;;  %v274_v51 = vmax.f32 %v246_v44, 0.0 }
  0xe0   :  { %v148_v50 = vpack.c.bf16 %v142_v43, %v141_v42  ;;  %v282_v52 = vpack.c.bf16 %v276_v47, %v275_v45 }
  0xe1   :  { %v147_v53 = vpack.c.bf16 %v140_v48, %v139_v46  ;;  %v734_v54 = vpop.f32.mrb[4].mxu0  ;;  %v281_v55 = vpack.c.bf16 %v274_v51, %v273_v49  ;;  %v744_v57 = vpop.f32.mrb[4].mxu1 }
  0xe2   :  { %v133_v56 = vadd.f32 %v734_v54, %v595_v26  ;;  %v124_v58 = vpop.f32.mrb[5].mxu0  ;;  %v267_v59 = vadd.f32 %v744_v57, %v595_v26  ;;  %v258_v61 = vpop.f32.mrb[5].mxu1 }
  0xe3   :  { %v125_v60 = vadd.f32 %v595_v26, %v124_v58  ;;  %v735_v62 = vpop.f32.mrb[6].mxu0  ;;  %786 = vmatprep.mubr.bf16.mxu0 %v147_v53  ;;  %v259_v63 = vadd.f32 %v595_v26, %v258_v61  ;;  %v745_v1 = vpop.f32.mrb[6].mxu1  ;;  %762 = vmatprep.mubr.bf16.mxu1 %v281_v55 }
  0xe4   :  { %v136_v0 = vadd.f32 %v735_v62, %v595_v26  ;;  %v127_v2 = vpop.f32.mrb[7].mxu0  ;;  %787 = vmatmul.mubr.bf16.vlgmr.msra.gmra.mrb[8].mxu0 %v148_v50  ;;  %v270_v3 = vadd.f32 %v745_v1, %v595_v26  ;;  %v261_v5 = vpop.f32.mrb[7].mxu1  ;;  %763 = vmatmul.mubr.bf16.vlgmr.msra.gmra.mrb[8].mxu1 %v282_v52  ;;  %v145_v6 = vmax.f32 %v133_v56, 0.0  ;;  %v279_v9 = vmax.f32 %v267_v59, 0.0 }
  0xe5   :  { %v128_v4 = vadd.f32 %v595_v26, %v127_v2  ;;  %v262_v8 = vadd.f32 %v595_v26, %v261_v5  ;;  %v143_v10 = vmax.f32 %v125_v60, 0.0  ;;  %v277_v13 = vmax.f32 %v259_v63, 0.0 }
  0xe6   :  { %v146_v7 = vmax.f32 %v136_v0, 0.0  ;;  %v280_v11 = vmax.f32 %v270_v3, 0.0 }
  0xe7   :  { %v144_v12 = vmax.f32 %v128_v4, 0.0  ;;  %v278_v15 = vmax.f32 %v262_v8, 0.0 }
  0xe8   :  { %v150_v14 = vpack.c.bf16 %v146_v7, %v145_v6  ;;  %v284_v16 = vpack.c.bf16 %v280_v11, %v279_v9 }
  0xe9   :  { %v149_v17 = vpack.c.bf16 %v144_v12, %v143_v10  ;;  %v283_v18 = vpack.c.bf16 %v278_v15, %v277_v13 }
  0xeb   :  { %790 = vmatprep.mubr.bf16.mxu0 %v149_v17  ;;  %766 = vmatprep.mubr.bf16.mxu1 %v283_v18 }
  0xec   :  { %791 = vmatmul.mubr.bf16.gmra.mrb[12].mxu0 %v150_v14  ;;  %767 = vmatmul.mubr.bf16.gmra.mrb[12].mxu1 %v284_v16 }
 0x1b7   :  { %v788_v19 = vpop.f32.mrb[8].mxu0  ;;  %v764_v20 = vpop.f32.mrb[8].mxu1 }
 0x1b8   :  { %v497_v22 = vpop.f32.mrb[9].mxu0  ;;  %v506_v23 = vadd.f32 %v788_v19, %v764_v20  ;;  %v384_v24 = vpop.f32.mrb[9].mxu1 }
 0x1b9   :  { %v789_v25 = vpop.f32.mrb[10].mxu0  ;;  %v498_v26 = vadd.f32 %v497_v22, %v384_v24  ;;  %v765_v27 = vpop.f32.mrb[10].mxu1 }
 0x1ba   :  { %v500_v28 = vpop.f32.mrb[11].mxu0  ;;  %v537_v29 = vadd.f32 %v652_v21, %v506_v23  ;;  %v509_v30 = vadd.f32 %v789_v25, %v765_v27  ;;  %v387_v31 = vpop.f32.mrb[11].mxu1 }
 0x1bb   :  { %v535_v32 = vadd.f32 %v652_v21, %v498_v26  ;;  %v501_v33 = vadd.f32 %v500_v28, %v387_v31 }
 0x1bc   :  { %v538_v34 = vadd.f32 %v652_v21, %v509_v30  ;;  %v545_v36 = vmax.f32 %v537_v29, 0.0 }
 0x1bd   :  { %v536_v35 = vadd.f32 %v652_v21, %v501_v33  ;;  %v543_v39 = vmax.f32 %v535_v32, 0.0 }
 0x1be   :  { %v546_v37 = vmax.f32 %v538_v34, 0.0 }
 0x1bf   :  { %v792_v38 = vpop.f32.mrb[12].mxu0  ;;  %v544_v40 = vmax.f32 %v536_v35, 0.0  ;;  %v768_v41 = vpop.f32.mrb[12].mxu1 }
 0x1c0   :  { %v513_v42 = vpop.f32.mrb[13].mxu0  ;;  %v677_v43 = vpack.c.bf16 %v546_v37, %v545_v36  ;;  %v522_v44 = vadd.f32 %v792_v38, %v768_v41  ;;  %v400_v45 = vpop.f32.mrb[13].mxu1 }
 0x1c1   :  { %v793_v46 = vpop.f32.mrb[14].mxu0  ;;  %v672_v47 = vpack.c.bf16 %v544_v40, %v543_v39  ;;  %v514_v48 = vadd.f32 %v513_v42, %v400_v45  ;;  %v769_v49 = vpop.f32.mrb[14].mxu1 }
 0x1c2   :  { %v516_v50 = vpop.f32.mrb[15].mxu0  ;;  %689 = vst [vmem:[%s964_s5 + $0x8] sm:$0xff] %v677_v43   ;;  %v541_v51 = vadd.f32 %v652_v21, %v522_v44  ;;  %v525_v52 = vadd.f32 %v793_v46, %v769_v49  ;;  %v403_v53 = vpop.f32.mrb[15].mxu1 }
 0x1c3   :  { %673 = vst [vmem:[%s964_s5] sm:$0xff] %v672_v47   ;;  %v539_v54 = vadd.f32 %v652_v21, %v514_v48  ;;  %v517_v55 = vadd.f32 %v516_v50, %v403_v53 }
 0x1c4   :  { %v542_v56 = vadd.f32 %v652_v21, %v525_v52  ;;  %v549_v58 = vmax.f32 %v541_v51, 0.0 }
 0x1c5   :  { %v540_v57 = vadd.f32 %v652_v21, %v517_v55  ;;  %v547_v60 = vmax.f32 %v539_v54, 0.0 }
 0x1c6   :  { %v550_v59 = vmax.f32 %v542_v56, 0.0 }
 0x1c7   :  { %v548_v61 = vmax.f32 %v540_v57, 0.0 }
 0x1c8   :  { %v687_v62 = vpack.c.bf16 %v550_v59, %v549_v58 }
 0x1c9   :  { %v682_v63 = vpack.c.bf16 %v548_v61, %v547_v60 }
 0x1ca   :  { %691 = vst [vmem:[%s964_s5 + $0x18] sm:$0xff] %v687_v62  }
 0x1cb   :  { %690 = vst [vmem:[%s964_s5 + $0x10] sm:$0xff] %v682_v63  }

// kernel: supervised_forward.3
= control target key start
LH: loop header
LB: loop body
LE: loop exit
PB: predicated region body
PF: predicated region fallthrough
CT: control target
= control target key end

     0   :  { %v2945_v1 = vmov 0   ;;  %v2947_v35 = vmov 0.0   ;;  %vm2165_vm0 = vmmov 0   ;;  %v2166_v53 = vmov 0.0|0.0   ;;  %s2937_s1 = inlined_call_operand.vmem [shape: bf16[128,384], index: 1, kind: input, shape index: {}]   ;;  %s2938_s0 = inlined_call_operand.vmem [shape: bf16[8,8,128], index: 0, kind: input, shape index: {}]   ;;  %s2939_s2 = inlined_call_operand.vmem [shape: bf16[128,384], index: 2, kind: input, shape index: {}]   ;;  %s2940_s3 = inlined_call_operand.vmem [shape: f32[1,384], index: 3, kind: input, shape index: {}]   ;;  %s2941_s4 = inlined_call_operand.vmem [shape: f32[1,384], index: 4, kind: input, shape index: {}]   ;;  %s2942_s5 = inlined_call_operand.vmem [shape: bf16[128,128], index: 5, kind: input, shape index: {}]   ;;  %s2943_s6 = inlined_call_operand.vmem [shape: f32[1,128], index: 6, kind: input, shape index: {}]   ;;  %s2944_s7 = inlined_call_operand.vmem [shape: f32[8,128], index: 7, kind: output, shape index: {}]  }
   0x1   :  { %v1983_v0 = vld [vmem:[%s2937_s1 + $0x4] ss:$12 sps:$4 sm:$0xff]   ;;  %273 = vmatprep.mubr.bf16.mxu0 %v2945_v1  ;;  %v1985_v2 = vld [vmem:[%s2937_s1] ss:$12 sps:$4 sm:$0xff]   ;;  %v1986_v3 = vld [vmem:[%s2937_s1 + $0x1c] ss:$12 sps:$4 sm:$0xff]   ;;  %v74_v55 = vlaneseq }
   0x2   :  { %241 = vmatprep.subr.bf16.mxu0 %v1983_v0  ;;  %v1988_v4 = vld [vmem:[%s2937_s1 + $0x18] ss:$12 sps:$4 sm:$0xff]   ;;  %v1989_v5 = vld [vmem:[%s2937_s1 + $0x34] ss:$12 sps:$4 sm:$0xff]   ;;  %v1991_v6 = vld [vmem:[%s2937_s1 + $0x30] ss:$12 sps:$4 sm:$0xff]  }
   0x3   :  { %242 = vmatpush1.bf16.msra.mxu0 %v1985_v2  ;;  %v1992_v7 = vld [vmem:[%s2937_s1 + $0x4c] ss:$12 sps:$4 sm:$0xff]   ;;  %v2004_v8 = vld [vmem:[%s2937_s1 + $0x8] ss:$12 sps:$4 sm:$0xff]   ;;  %v1995_v10 = vld [vmem:[%s2937_s1 + $0x64] ss:$12 sps:$4 sm:$0xff]  }
   0x4   :  { %243 = vmatprep.subr.bf16.mxu0 %v1986_v3  ;;  %v1994_v9 = vld [vmem:[%s2937_s1 + $0x48] ss:$12 sps:$4 sm:$0xff]   ;;  %1775 = vmatprep.subr.bf16.mxu1 %v2004_v8  ;;  %v2008_v11 = vld [vmem:[%s2937_s1 + $0x20] ss:$12 sps:$4 sm:$0xff]   ;;  %v2013_v14 = vld [vmem:[%s2937_s1 + $0x38] ss:$12 sps:$4 sm:$0xff]  }
   0x5   :  { %1776 = vmatpush3.bf16.msra.mxu1 %v2004_v8  ;;  %v2009_v12 = vld [vmem:[%s2938_s0] sm:$0xff]   ;;  %v1998_v15 = vld [vmem:[%s2937_s1 + $0x7c] ss:$12 sps:$4 sm:$0xff]   ;;  %v2005_v21 = vld [vmem:[%s2937_s1 + $0xac] ss:$12 sps:$4 sm:$0xff]   ;;  %v2487_v56 = vshrl.u32 %v74_v55, 7 }
   0x6   :  { %v1997_v13 = vld [vmem:[%s2937_s1 + $0x60] ss:$12 sps:$4 sm:$0xff]   ;;  %1777 = vmatprep.subr.bf16.mxu1 %v2008_v11  ;;  %1791 = vmatprep.mubr.bf16.mxu1 %v2009_v12  ;;  %v2017_v16 = vld [vmem:[%s2937_s1 + $0x50] ss:$12 sps:$4 sm:$0xff]   ;;  %v2000_v17 = vld [vmem:[%s2937_s1 + $0x78] ss:$12 sps:$4 sm:$0xff]  }
   0x7   :  { %244 = vmatpush1.bf16.msra.mxu0 %v1988_v4  ;;  %v2001_v18 = vld [vmem:[%s2937_s1 + $0x94] ss:$12 sps:$4 sm:$0xff]   ;;  %v2003_v20 = vld [vmem:[%s2937_s1 + $0x90] ss:$12 sps:$4 sm:$0xff]   ;;  %v2031_v25 = vld [vmem:[%s2937_s1 + $0x98] ss:$12 sps:$4 sm:$0xff]  }
   0x8   :  { %245 = vmatprep.subr.bf16.mxu0 %v1989_v5  ;;  %v2022_v19 = vld [vmem:[%s2937_s1 + $0x68] ss:$12 sps:$4 sm:$0xff]   ;;  %v2026_v22 = vld [vmem:[%s2937_s1 + $0x80] ss:$12 sps:$4 sm:$0xff]   ;;  %v2280_v24 = vld [vmem:[%s2939_s2 + $0x4] ss:$12 sps:$4 sm:$0xff]  }
   0x9   :  { %1778 = vmatpush3.bf16.msra.mxu1 %v2008_v11  ;;  %v2007_v23 = vld [vmem:[%s2937_s1 + $0xa8] ss:$12 sps:$4 sm:$0xff]   ;;  %v2288_v26 = vld [vmem:[%s2939_s2] ss:$12 sps:$4 sm:$0xff]   ;;  %v2035_v28 = vld [vmem:[%s2937_s1 + $0xb0] ss:$12 sps:$4 sm:$0xff]  }
   0xa   :  { %1779 = vmatprep.subr.bf16.mxu1 %v2013_v14  ;;  %v2294_v27 = vld [vmem:[%s2939_s2 + $0x1c] ss:$12 sps:$4 sm:$0xff]   ;;  %v2303_v29 = vld [vmem:[%s2939_s2 + $0x18] ss:$12 sps:$4 sm:$0xff]   ;;  %v2310_v30 = vld [vmem:[%s2939_s2 + $0x34] ss:$12 sps:$4 sm:$0xff]  }
   0xb   :  { %246 = vmatpush1.bf16.msra.mxu0 %v1991_v6  ;;  %v2018_v31 = vld [vmem:[%s2938_s0 + $0x8] sm:$0xff]   ;;  %v2319_v32 = vld [vmem:[%s2939_s2 + $0x30] ss:$12 sps:$4 sm:$0xff]   ;;  %v2372_v42 = vld [vmem:[%s2939_s2 + $0x38] ss:$12 sps:$4 sm:$0xff]   ;;  %v76_v57 = vsub.s32 0, %v2487_v56 }
   0xc   :  { %247 = vmatprep.subr.bf16.mxu0 %v1992_v7  ;;  %v2325_v33 = vld [vmem:[%s2939_s2 + $0x4c] ss:$12 sps:$4 sm:$0xff]   ;;  %v2330_v34 = vld [vmem:[%s2939_s2 + $0x8] ss:$12 sps:$4 sm:$0xff]   ;;  %v2347_v38 = vld [vmem:[%s2939_s2 + $0x64] ss:$12 sps:$4 sm:$0xff]  }
   0xd   :  { %1780 = vmatpush3.bf16.msra.mxu1 %v2013_v14  ;;  %v2337_v36 = vld [vmem:[%s2939_s2 + $0x48] ss:$12 sps:$4 sm:$0xff]   ;;  %v2353_v39 = vld [vmem:[%s2939_s2 + $0x20] ss:$12 sps:$4 sm:$0xff]   ;;  %v2036_v43 = vld [vmem:[%s2938_s0 + $0x18] sm:$0xff]   ;;  %v80_v59 = vsub.s32 1, %v2487_v56 }
   0xe   :  { %1781 = vmatprep.subr.bf16.mxu1 %v2017_v16  ;;  %v2027_v37 = vld [vmem:[%s2938_s0 + $0x10] sm:$0xff]   ;;  %v2360_v40 = vld [vmem:[%s2939_s2 + $0x60] ss:$12 sps:$4 sm:$0xff]   ;;  %v2366_v41 = vld [vmem:[%s2939_s2 + $0x7c] ss:$12 sps:$4 sm:$0xff]   ;;  %v2949_v4 = vsub.s32 2, %v2487_v56 }
   0xf   :  { %248 = vmatpush1.bf16.msra.mxu0 %v1994_v9  ;;  %v2382_v44 = vld [vmem:[%s2939_s2 + $0x78] ss:$12 sps:$4 sm:$0xff]   ;;  %v2389_v45 = vld [vmem:[%s2939_s2 + $0x94] ss:$12 sps:$4 sm:$0xff]   ;;  %v2395_v46 = vld [vmem:[%s2939_s2 + $0x50] ss:$12 sps:$4 sm:$0xff]  }
  0x10   :  { %249 = vmatprep.subr.bf16.mxu0 %v1995_v10  ;;  %v2404_v47 = vld [vmem:[%s2939_s2 + $0x90] ss:$12 sps:$4 sm:$0xff]   ;;  %v2410_v48 = vld [vmem:[%s2939_s2 + $0xac] ss:$12 sps:$4 sm:$0xff]   ;;  %v2416_v49 = vld [vmem:[%s2939_s2 + $0x68] ss:$12 sps:$4 sm:$0xff]  }
  0x11   :  { %1782 = vmatpush3.bf16.msra.mxu1 %v2017_v16  ;;  %v2423_v50 = vld [vmem:[%s2939_s2 + $0xa8] ss:$12 sps:$4 sm:$0xff]   ;;  %v2431_v51 = vld [vmem:[%s2939_s2 + $0x80] ss:$12 sps:$4 sm:$0xff]   ;;  %v2440_v52 = vld [vmem:[%s2939_s2 + $0x98] ss:$12 sps:$4 sm:$0xff]  }
  0x12   :  { %1783 = vmatprep.subr.bf16.mxu1 %v2022_v19  ;;  %v2450_v54 = vld [vmem:[%s2939_s2 + $0xb0] ss:$12 sps:$4 sm:$0xff]   ;;  %v72_v58 = vld [vmem:[%s2940_s3] sm:$0x7] }
  0x13   :  { %250 = vmatpush1.bf16.msra.mxu0 %v1997_v13  ;;  %v77_v61 = vrot.slane %v72_v58, %v76_v57  ;;  %v81_v63 = vrot.slane %v72_v58, %v80_v59  ;;  %v2501_v6 = vrot.slane %v72_v58, %v2949_v4 }
  0x14   :  { %251 = vmatprep.subr.bf16.mxu0 %v1998_v15 }
  0x15   :  { %1784 = vmatpush3.bf16.msra.mxu1 %v2022_v19 }
  0x16   :  { %1785 = vmatprep.subr.bf16.mxu1 %v2026_v22 }
  0x17   :  { %252 = vmatpush1.bf16.msra.mxu0 %v2000_v17 }
  0x18   :  { %253 = vmatprep.subr.bf16.mxu0 %v2001_v18 }
  0x19   :  { %1786 = vmatpush3.bf16.msra.mxu1 %v2026_v22 }
  0x1a   :  { %1787 = vmatprep.subr.bf16.mxu1 %v2031_v25 }
  0x1b   :  { %254 = vmatpush1.bf16.msra.mxu0 %v2003_v20 }
  0x1c   :  { %255 = vmatprep.subr.bf16.mxu0 %v2005_v21 }
  0x1d   :  { %1788 = vmatpush3.bf16.msra.mxu1 %v2031_v25 }
  0x1e   :  { %1789 = vmatprep.subr.bf16.mxu1 %v2035_v28 }
  0x1f   :  { %256 = vmatpush1.bf16.msra.mxu0 %v2007_v23 }
  0x20   :  { %586 = vmatprep.subr.bf16.mxu0 %v2280_v24 }
  0x21   :  { %1790 = vmatpush3.bf16.msra.mxu1 %v2035_v28 }
  0x22   :  { %274 = vmatmul.mubr.bf16.vlgmr.msra.gmra.mrb[0].mxu0 %v2009_v12  ;;  %1799 = vmatprep.subr.bf16.mxu1 %v2947_v35 }
  0x23   :  { %587 = vmatpush1.bf16.msra.mxu0 %v2288_v26  ;;  %283 = vmatprep.mubr.bf16.mxu0 %v2945_v1 }
  0x24   :  { %588 = vmatprep.subr.bf16.mxu0 %v2294_v27  ;;  %1792 = vmatmul.mubr.bf16.vlgmr.msra.gmra.mrb[0].mxu1 %v2018_v31 }
  0x25   :  { %1800 = vmatpush3.bf16.msra.mxu1 %v2330_v34  ;;  %1795 = vmatprep.mubr.bf16.mxu1 %v2027_v37 }
  0x26   :  { %1801 = vmatprep.subr.bf16.mxu1 %v2947_v35 }
  0x27   :  { %589 = vmatpush1.bf16.msra.mxu0 %v2303_v29 }
  0x28   :  { %590 = vmatprep.subr.bf16.mxu0 %v2310_v30 }
  0x29   :  { %1802 = vmatpush3.bf16.msra.mxu1 %v2353_v39 }
  0x2a   :  { %284 = vmatmul.mubr.bf16.gmra.mrb[4].mxu0 %v2018_v31  ;;  %1803 = vmatprep.subr.bf16.mxu1 %v2947_v35 }
  0x2b   :  { %591 = vmatpush1.bf16.msra.mxu0 %v2319_v32  ;;  %293 = vmatprep.mubr.bf16.mxu0 %v2945_v1 }
  0x2c   :  { %592 = vmatprep.subr.bf16.mxu0 %v2325_v33  ;;  %1796 = vmatmul.mubr.bf16.gmra.mrb[4].mxu1 %v2036_v43 }
  0x2d   :  { %1804 = vmatpush3.bf16.msra.mxu1 %v2372_v42  ;;  %1815 = vmatprep.mubr.msk.bf16.mxu1 %vm2165_vm0, %v2947_v35 }
  0x2e   :  { %1805 = vmatprep.subr.bf16.mxu1 %v2947_v35 }
  0x2f   :  { %593 = vmatpush1.bf16.msra.mxu0 %v2337_v36 }
  0x30   :  { %594 = vmatprep.subr.bf16.mxu0 %v2347_v38 }
  0x31   :  { %1806 = vmatpush3.bf16.msra.mxu1 %v2395_v46 }
  0x32   :  { %294 = vmatmul.mubr.bf16.gmra.mrb[8].mxu0 %v2027_v37  ;;  %1807 = vmatprep.subr.bf16.mxu1 %v2947_v35 }
  0x33   :  { %595 = vmatpush1.bf16.msra.mxu0 %v2360_v40  ;;  %303 = vmatprep.mubr.bf16.mxu0 %v2945_v1 }
  0x34   :  { %596 = vmatprep.subr.bf16.mxu0 %v2366_v41 }
  0x35   :  { %1808 = vmatpush3.bf16.msra.mxu1 %v2416_v49 }
  0x36   :  { %1809 = vmatprep.subr.bf16.mxu1 %v2947_v35 }
  0x37   :  { %597 = vmatpush1.bf16.msra.mxu0 %v2382_v44 }
  0x38   :  { %598 = vmatprep.subr.bf16.mxu0 %v2389_v45 }
  0x39   :  { %1810 = vmatpush3.bf16.msra.mxu1 %v2431_v51 }
  0x3a   :  { %304 = vmatmul.mubr.bf16.gmra.mrb[12].mxu0 %v2036_v43  ;;  %1811 = vmatprep.subr.bf16.mxu1 %v2947_v35 }
  0x3b   :  { %599 = vmatpush1.bf16.msra.mxu0 %v2404_v47  ;;  %618 = vmatprep.mubr.bf16.mxu0 %v2945_v1 }
  0x3c   :  { %600 = vmatprep.subr.bf16.mxu0 %v2410_v48 }
  0x3d   :  { %1812 = vmatpush3.bf16.msra.mxu1 %v2440_v52 }
  0x3e   :  { %1813 = vmatprep.subr.bf16.mxu1 %v2947_v35 }
  0x3f   :  { %601 = vmatpush1.bf16.msra.mxu0 %v2423_v50 }
  0x40   :  { %698 = vmatprep.subr.bf16.mxu0 %v2280_v24 }
  0x41   :  { %1814 = vmatpush3.bf16.msra.mxu1 %v2450_v54 }
  0x42   :  { %619 = vmatmul.mubr.bf16.vlgmr.msra.gmra.mrb[16].mxu0 %v2166_v53  ;;  %1819 = vmatprep.subr.bf16.mxu1 %v2947_v35 }
  0x43   :  { %699 = vmatpush1.bf16.msra.mxu0 %v2288_v26  ;;  %730 = vmatprep.mubr.bf16.mxu0 %v2945_v1 }
  0x44   :  { %700 = vmatprep.subr.bf16.mxu0 %v2294_v27  ;;  %1816 = vmatmul.mubr.bf16.vlgmr.msra.gmra.mrb[8].mxu1 %v2166_v53 }
  0x45   :  { %1820 = vmatpush3.bf16.msra.mxu1 %v2330_v34  ;;  %1835 = vmatprep.mubr.msk.bf16.mxu1 %vm2165_vm0, %v2947_v35 }
  0x46   :  { %1821 = vmatprep.subr.bf16.mxu1 %v2947_v35 }
  0x47   :  { %701 = vmatpush1.bf16.msra.mxu0 %v2303_v29 }
  0x48   :  { %702 = vmatprep.subr.bf16.mxu0 %v2310_v30 }
  0x49   :  { %1822 = vmatpush3.bf16.msra.mxu1 %v2353_v39 }
  0x4a   :  { %1823 = vmatprep.subr.bf16.mxu1 %v2947_v35 }
  0x4b   :  { %703 = vmatpush1.bf16.msra.mxu0 %v2319_v32 }
  0x4c   :  { %704 = vmatprep.subr.bf16.mxu0 %v2325_v33 }
  0x4d   :  { %1824 = vmatpush3.bf16.msra.mxu1 %v2372_v42 }
  0x4e   :  { %1825 = vmatprep.subr.bf16.mxu1 %v2947_v35 }
  0x4f   :  { %705 = vmatpush1.bf16.msra.mxu0 %v2337_v36 }
  0x50   :  { %706 = vmatprep.subr.bf16.mxu0 %v2347_v38 }
  0x51   :  { %1826 = vmatpush3.bf16.msra.mxu1 %v2395_v46 }
  0x52   :  { %1827 = vmatprep.subr.bf16.mxu1 %v2947_v35 }
  0x53   :  { %707 = vmatpush1.bf16.msra.mxu0 %v2360_v40 }
  0x54   :  { %708 = vmatprep.subr.bf16.mxu0 %v2366_v41 }
  0x55   :  { %1828 = vmatpush3.bf16.msra.mxu1 %v2416_v49 }
  0x56   :  { %1829 = vmatprep.subr.bf16.mxu1 %v2947_v35 }
  0x57   :  { %709 = vmatpush1.bf16.msra.mxu0 %v2382_v44 }
  0x58   :  { %710 = vmatprep.subr.bf16.mxu0 %v2389_v45 }
  0x59   :  { %1830 = vmatpush3.bf16.msra.mxu1 %v2431_v51 }
  0x5a   :  { %1831 = vmatprep.subr.bf16.mxu1 %v2947_v35 }
  0x5b   :  { %711 = vmatpush1.bf16.msra.mxu0 %v2404_v47 }
  0x5c   :  { %712 = vmatprep.subr.bf16.mxu0 %v2410_v48 }
  0x5d   :  { %1832 = vmatpush3.bf16.msra.mxu1 %v2440_v52 }
  0x5e   :  { %1833 = vmatprep.subr.bf16.mxu1 %v2947_v35 }
  0x5f   :  { %713 = vmatpush1.bf16.msra.mxu0 %v2423_v50 }
  0x60   :  { %811 = vmatprep.subr.bf16.mxu0 %v2280_v24 }
  0x61   :  { %1834 = vmatpush3.bf16.msra.mxu1 %v2450_v54 }
  0x62   :  { %1839 = vmatprep.subr.bf16.mxu1 %v2947_v35 }
  0xf5   :  { %v275_v60 = vpop.f32.mrb[0].mxu0 }
  0xf6   :  { %v277_v62 = vpop.f32.mrb[1].mxu0 }
  0xf7   :  { %v279_v0 = vpop.f32.mrb[2].mxu0  ;;  %v1793_v12 = vpop.f32.mrb[0].mxu1  ;;  %v278_v4 = vadd.f32 %v277_v62, %v81_v63 }
  0xf8   :  { %v2494_v2 = vadd.f32 %v279_v0, %v77_v61  ;;  %v281_v3 = vpop.f32.mrb[3].mxu0  ;;  %v2510_v15 = vadd.f32 %v1793_v12, %v2501_v6  ;;  %v348_v16 = vpop.f32.mrb[1].mxu1 }
  0xf9   :  { %v2497_v5 = vadd.f32 %v281_v3, %v81_v63  ;;  %v1794_v18 = vpop.f32.mrb[2].mxu1 }
  0xfa   :  { %v2515_v19 = vadd.f32 %v1794_v18, %v2501_v6  ;;  %v351_v20 = vpop.f32.mrb[3].mxu1 }
  0xfb   :  { %v2518_v21 = vadd.f32 %v351_v20, %v2501_v6 }
  0xfd   :  { %v285_v7 = vpop.f32.mrb[4].mxu0 }
  0xfe   :  { %v2503_v8 = vadd.f32 %v285_v7, %v77_v61  ;;  %v287_v9 = vpop.f32.mrb[5].mxu0 }
  0xff   :  { %v2505_v10 = vadd.f32 %v287_v9, %v81_v63  ;;  %v289_v11 = vpop.f32.mrb[6].mxu0  ;;  %v1797_v37 = vpop.f32.mrb[4].mxu1 }
 0x100   :  { %v2507_v13 = vadd.f32 %v289_v11, %v77_v61  ;;  %v291_v14 = vpop.f32.mrb[7].mxu0  ;;  %v2527_v55 = vadd.f32 %v1797_v37, %v2501_v6  ;;  %v364_v58 = vpop.f32.mrb[5].mxu1 }
 0x101   :  { %v2512_v17 = vadd.f32 %v291_v14, %v81_v63  ;;  %v2532_v3 = vadd.f32 %v364_v58, %v2501_v6  ;;  %v1798_v7 = vpop.f32.mrb[6].mxu1 }
 0x102   :  { %2950 = vst [vmem:[#allocation4_spill] sm:$0xff] %v2527_v55  ;;  %v2535_v9 = vadd.f32 %v1798_v7, %v2501_v6  ;;  %v367_v11 = vpop.f32.mrb[7].mxu1 }
 0x103   :  { %v2538_v12 = vadd.f32 %v367_v11, %v2501_v6 }
 0x104   :  { %2952 = vst [vmem:[#allocation6_spill] sm:$0xff] %v2535_v9 }
 0x105   :  { %v295_v22 = vpop.f32.mrb[8].mxu0  ;;  %2953 = vst [vmem:[#allocation7_spill] sm:$0xff] %v2538_v12 }
 0x106   :  { %v2520_v23 = vadd.f32 %v295_v22, %v77_v61  ;;  %v297_v25 = vpop.f32.mrb[9].mxu0 }
 0x107   :  { %v2522_v28 = vadd.f32 %v297_v25, %v81_v63  ;;  %v299_v31 = vpop.f32.mrb[10].mxu0 }
 0x108   :  { %v2524_v43 = vadd.f32 %v299_v31, %v77_v61  ;;  %v301_v53 = vpop.f32.mrb[11].mxu0  ;;  %v435_v31 = vld [vmem:[%s2941_s4] sm:$0x7] }
 0x109   :  { %v2529_v0 = vadd.f32 %v301_v53, %v81_v63  ;;  %v2551_v7 = vrot.slane %v435_v31, %v76_v57  ;;  %v2553_v11 = vrot.slane %v435_v31, %v80_v59 }
 0x10b   :  { %2951 = vst [vmem:[#allocation5_spill] sm:$0xff] %v2529_v0 }
 0x10d   :  { %v305_v14 = vpop.f32.mrb[12].mxu0 }
 0x10e   :  { %v2540_v18 = vadd.f32 %v305_v14, %v77_v61  ;;  %v307_v20 = vpop.f32.mrb[13].mxu0  ;;  %v276_v14 = vadd.f32 %v275_v60, %v77_v61 }
 0x10f   :  { %v2542_v22 = vadd.f32 %v307_v20, %v81_v63  ;;  %v309_v25 = vpop.f32.mrb[14].mxu0 }
 0x110   :  { %2954 = vst [vmem:[#allocation8_spill] sm:$0xff] %v2540_v18  ;;  %v2547_v37 = vadd.f32 %v309_v25, %v77_v61  ;;  %v311_v53 = vpop.f32.mrb[15].mxu0 }
 0x111   :  { %2955 = vst [vmem:[#allocation9_spill] sm:$0xff] %v2542_v22  ;;  %v2549_v58 = vadd.f32 %v311_v53, %v81_v63 }
 0x112   :  { %2956 = vst [vmem:[#allocation10_spill] sm:$0xff] %v2547_v37 }
 0x113   :  { %2957 = vst [vmem:[#allocation11_spill] sm:$0xff] %v2549_v58 }
 0x115   :  { %v620_v1 = vpop.f32.mrb[16].mxu0 }
 0x116   :  { %v621_v35 = vadd.f32 %v620_v1, %v2551_v7  ;;  %v622_v20 = vpop.f32.mrb[17].mxu0  ;;  %v2958_v1 = vsub.s32 2, %v2487_v56 }
 0x117   :  { %v623_v9 = vadd.f32 %v622_v20, %v2553_v11  ;;  %v624_v55 = vpop.f32.mrb[18].mxu0  ;;  %v661_v58 = vpop.f32.mrb[8].mxu1 }
 0x118   :  { %v667_v22 = vadd.f32 %v621_v35, %v276_v14  ;;  %v625_v18 = vpop.f32.mrb[19].mxu0  ;;  %v1817_v57 = vpop.f32.mrb[9].mxu1  ;;  %v2559_v61 = vrot.slane %v435_v31, %v2958_v1  ;;  %v349_v55 = vadd.f32 %v348_v16, %v2501_v6  ;;  %v2959_v6 = vmov 0.0  }
 0x119   :  { %v674_v25 = vadd.f32 %v623_v9, %v278_v4  ;;  %v664_v12 = vpop.f32.mrb[10].mxu1  ;;  %v2960_v16 = vmov 0  }
 0x11a   :  { %v1657_v37 = vmul.f32 -1.442695, %v667_v22  ;;  %v1818_v59 = vpop.f32.mrb[11].mxu1  ;;  %v662_v35 = vadd.f32 %v661_v58, %v2559_v61 }
 0x11b   :  { %v1658_v53 = vmul.f32 -1.442695, %v674_v25 }
 0x11c   :  { %2059 = vpow2.f32 %v1657_v37 }
 0x11d   :  { %2061 = vpow2.f32 %v1658_v53 }
 0x126   :  { %v2060_v0 = vpop.eup %2059 }
 0x127   :  { %v671_v60 = vadd.f32 1.0, %v2060_v0  ;;  %v2062_v62 = vpop.eup %2061 }
 0x128   :  { %v678_v63 = vadd.f32 1.0, %v2062_v62 }
 0x129   :  { %2063 = vrcp.f32 %v671_v60 }
 0x12a   :  { %2065 = vrcp.f32 %v678_v63 }
 0x133   :  { %v2064_v4 = vpop.eup %2063 }
 0x134   :  { %v681_v9 = vmul.f32 %v2064_v4, %v662_v35  ;;  %v2066_v12 = vpop.eup %2065 }
 0x135   :  { %v684_v22 = vsub.f32 1.0, %v2066_v12  ;;  %v686_v14 = vmul.f32 0.0, %v2066_v12 }
 0x136   :  { %v682_v18 = vadd.f32 %v681_v9, %v349_v55 }
 0x138   :  { %2067 = vtanh.f32 %v682_v18 }
 0x142   :  { %v2068_v37 = vpop.eup %2067 }
 0x143   :  { %v685_v0 = vmul.f32 %v2068_v37, %v684_v22 }
 0x145   :  { %v2563_v20 = vadd.f32 %v686_v14, %v685_v0 }
 0x147   :  { %v697_v56 = vpack.c.bf16 %v2563_v20, %v2563_v20 }
 0x149   :  { %731 = vmatmul.mubr.bf16.vlgmr.msra.gmra.mrb[20].mxu0 %v697_v56  ;;  %1836 = vmatmul.mubr.bf16.vlgmr.msra.gmra.mrb[12].mxu1 %v697_v56 }
 0x14a   :  { %812 = vmatpush1.bf16.msra.mxu0 %v2288_v26  ;;  %1840 = vmatpush3.bf16.msra.mxu1 %v2330_v34 }
 0x14b   :  { %813 = vmatprep.subr.bf16.mxu0 %v2294_v27  ;;  %1841 = vmatprep.subr.bf16.mxu1 %v2959_v6 }
 0x14c   :  { %843 = vmatprep.mubr.bf16.mxu0 %v2960_v16  ;;  %1855 = vmatprep.mubr.msk.bf16.mxu1 %vm2165_vm0, %v2959_v6 }
 0x14e   :  { %814 = vmatpush1.bf16.msra.mxu0 %v2303_v29  ;;  %1842 = vmatpush3.bf16.msra.mxu1 %v2353_v39 }
 0x14f   :  { %815 = vmatprep.subr.bf16.mxu0 %v2310_v30  ;;  %1843 = vmatprep.subr.bf16.mxu1 %v2959_v6 }
 0x152   :  { %816 = vmatpush1.bf16.msra.mxu0 %v2319_v32  ;;  %1844 = vmatpush3.bf16.msra.mxu1 %v2372_v42 }
 0x153   :  { %817 = vmatprep.subr.bf16.mxu0 %v2325_v33  ;;  %1845 = vmatprep.subr.bf16.mxu1 %v2959_v6 }
 0x156   :  { %818 = vmatpush1.bf16.msra.mxu0 %v2337_v36  ;;  %1846 = vmatpush3.bf16.msra.mxu1 %v2395_v46 }
 0x157   :  { %819 = vmatprep.subr.bf16.mxu0 %v2347_v38  ;;  %1847 = vmatprep.subr.bf16.mxu1 %v2959_v6 }
 0x15a   :  { %820 = vmatpush1.bf16.msra.mxu0 %v2360_v40  ;;  %1848 = vmatpush3.bf16.msra.mxu1 %v2416_v49 }
 0x15b   :  { %821 = vmatprep.subr.bf16.mxu0 %v2366_v41  ;;  %1849 = vmatprep.subr.bf16.mxu1 %v2959_v6 }
 0x15e   :  { %822 = vmatpush1.bf16.msra.mxu0 %v2382_v44  ;;  %1850 = vmatpush3.bf16.msra.mxu1 %v2431_v51 }
 0x15f   :  { %823 = vmatprep.subr.bf16.mxu0 %v2389_v45  ;;  %1851 = vmatprep.subr.bf16.mxu1 %v2959_v6 }
 0x162   :  { %824 = vmatpush1.bf16.msra.mxu0 %v2404_v47  ;;  %1852 = vmatpush3.bf16.msra.mxu1 %v2440_v52 }
 0x163   :  { %825 = vmatprep.subr.bf16.mxu0 %v2410_v48  ;;  %1853 = vmatprep.subr.bf16.mxu1 %v2959_v6 }
 0x166   :  { %826 = vmatpush1.bf16.msra.mxu0 %v2423_v50  ;;  %1854 = vmatpush3.bf16.msra.mxu1 %v2450_v54 }
 0x167   :  { %924 = vmatprep.subr.bf16.mxu0 %v2280_v24  ;;  %1859 = vmatprep.subr.bf16.mxu1 %v2959_v6 }
 0x21c   :  { %v732_v31 = vpop.f32.mrb[20].mxu0  ;;  %v773_v58 = vpop.f32.mrb[12].mxu1 }
 0x21d   :  { %v733_v25 = vadd.f32 %v732_v31, %v2551_v7  ;;  %v734_v53 = vpop.f32.mrb[21].mxu0  ;;  %v1837_v57 = vpop.f32.mrb[13].mxu1  ;;  %v774_v0 = vadd.f32 %v773_v58, %v2559_v61 }
 0x21e   :  { %v735_v59 = vadd.f32 %v734_v53, %v2553_v11  ;;  %v736_v60 = vpop.f32.mrb[22].mxu0  ;;  %v776_v1 = vpop.f32.mrb[14].mxu1 }
 0x21f   :  { %v779_v62 = vadd.f32 %v733_v25, %v2494_v2  ;;  %v737_v63 = vpop.f32.mrb[23].mxu0  ;;  %v1838_v35 = vpop.f32.mrb[15].mxu1 }
 0x220   :  { %v786_v4 = vadd.f32 %v735_v59, %v2497_v5 }
 0x221   :  { %v1659_v55 = vmul.f32 -1.442695, %v779_v62 }
 0x222   :  { %v1660_v9 = vmul.f32 -1.442695, %v786_v4 }
 0x223   :  { %2069 = vpow2.f32 %v1659_v55 }
 0x224   :  { %2071 = vpow2.f32 %v1660_v9 }
 0x22d   :  { %v2070_v18 = vpop.eup %2069 }
 0x22e   :  { %v783_v12 = vadd.f32 1.0, %v2070_v18  ;;  %v2072_v22 = vpop.eup %2071 }
 0x22f   :  { %v790_v37 = vadd.f32 1.0, %v2072_v22 }
 0x230   :  { %2073 = vrcp.f32 %v783_v12 }
 0x231   :  { %2075 = vrcp.f32 %v790_v37 }
 0x23a   :  { %v2074_v14 = vpop.eup %2073 }
 0x23b   :  { %v793_v56 = vmul.f32 %v2074_v14, %v774_v0  ;;  %v2076_v31 = vpop.eup %2075 }
 0x23c   :  { %v796_v25 = vsub.f32 1.0, %v2076_v31  ;;  %v798_v57 = vmul.f32 %v2076_v31, %v2563_v20 }
 0x23d   :  { %v794_v2 = vadd.f32 %v793_v56, %v2518_v21 }
 0x23f   :  { %2077 = vtanh.f32 %v794_v2 }
 0x249   :  { %v2078_v5 = vpop.eup %2077 }
 0x24a   :  { %v797_v53 = vmul.f32 %v2078_v5, %v796_v25 }
 0x24c   :  { %v2609_v59 = vadd.f32 %v798_v57, %v797_v53 }
 0x24e   :  { %v810_v60 = vpack.c.bf16 %v2609_v59, %v2609_v59 }
 0x250   :  { %844 = vmatmul.mubr.bf16.vlgmr.msra.gmra.mrb[24].mxu0 %v810_v60  ;;  %1856 = vmatmul.mubr.bf16.vlgmr.msra.gmra.mrb[16].mxu1 %v810_v60 }
 0x251   :  { %925 = vmatpush1.bf16.msra.mxu0 %v2288_v26  ;;  %1860 = vmatpush3.bf16.msra.mxu1 %v2330_v34 }
 0x252   :  { %926 = vmatprep.subr.bf16.mxu0 %v2294_v27  ;;  %1861 = vmatprep.subr.bf16.mxu1 %v2959_v6 }
 0x253   :  { %956 = vmatprep.mubr.bf16.mxu0 %v2960_v16  ;;  %1875 = vmatprep.mubr.msk.bf16.mxu1 %vm2165_vm0, %v2959_v6 }
 0x255   :  { %927 = vmatpush1.bf16.msra.mxu0 %v2303_v29  ;;  %1862 = vmatpush3.bf16.msra.mxu1 %v2353_v39 }
 0x256   :  { %928 = vmatprep.subr.bf16.mxu0 %v2310_v30  ;;  %1863 = vmatprep.subr.bf16.mxu1 %v2959_v6 }
 0x259   :  { %929 = vmatpush1.bf16.msra.mxu0 %v2319_v32  ;;  %1864 = vmatpush3.bf16.msra.mxu1 %v2372_v42 }
 0x25a   :  { %930 = vmatprep.subr.bf16.mxu0 %v2325_v33  ;;  %1865 = vmatprep.subr.bf16.mxu1 %v2959_v6 }
 0x25d   :  { %931 = vmatpush1.bf16.msra.mxu0 %v2337_v36  ;;  %1866 = vmatpush3.bf16.msra.mxu1 %v2395_v46 }
 0x25e   :  { %932 = vmatprep.subr.bf16.mxu0 %v2347_v38  ;;  %1867 = vmatprep.subr.bf16.mxu1 %v2959_v6 }
 0x261   :  { %933 = vmatpush1.bf16.msra.mxu0 %v2360_v40  ;;  %1868 = vmatpush3.bf16.msra.mxu1 %v2416_v49 }
 0x262   :  { %934 = vmatprep.subr.bf16.mxu0 %v2366_v41  ;;  %1869 = vmatprep.subr.bf16.mxu1 %v2959_v6 }
 0x265   :  { %935 = vmatpush1.bf16.msra.mxu0 %v2382_v44  ;;  %1870 = vmatpush3.bf16.msra.mxu1 %v2431_v51 }
 0x266   :  { %936 = vmatprep.subr.bf16.mxu0 %v2389_v45  ;;  %1871 = vmatprep.subr.bf16.mxu1 %v2959_v6 }
 0x269   :  { %937 = vmatpush1.bf16.msra.mxu0 %v2404_v47  ;;  %1872 = vmatpush3.bf16.msra.mxu1 %v2440_v52 }
 0x26a   :  { %938 = vmatprep.subr.bf16.mxu0 %v2410_v48  ;;  %1873 = vmatprep.subr.bf16.mxu1 %v2959_v6 }
 0x26d   :  { %939 = vmatpush1.bf16.msra.mxu0 %v2423_v50  ;;  %1874 = vmatpush3.bf16.msra.mxu1 %v2450_v54 }
 0x26e   :  { %1037 = vmatprep.subr.bf16.mxu0 %v2280_v24  ;;  %1879 = vmatprep.subr.bf16.mxu1 %v2959_v6 }
 0x323   :  { %v845_v21 = vpop.f32.mrb[24].mxu0  ;;  %v886_v20 = vpop.f32.mrb[16].mxu1 }
 0x324   :  { %v846_v58 = vadd.f32 %v845_v21, %v2551_v7  ;;  %v847_v1 = vpop.f32.mrb[25].mxu0  ;;  %v1857_v62 = vpop.f32.mrb[17].mxu1  ;;  %v887_v31 = vadd.f32 %v886_v20, %v2559_v61 }
 0x325   :  { %v848_v63 = vadd.f32 %v847_v1, %v2553_v11  ;;  %v849_v35 = vpop.f32.mrb[26].mxu0  ;;  %v889_v4 = vpop.f32.mrb[18].mxu1 }
 0x326   :  { %v892_v55 = vadd.f32 %v846_v58, %v2503_v8  ;;  %v850_v9 = vpop.f32.mrb[27].mxu0  ;;  %v1858_v18 = vpop.f32.mrb[19].mxu1 }
 0x327   :  { %v899_v12 = vadd.f32 %v848_v63, %v2505_v10 }
 0x328   :  { %v1661_v22 = vmul.f32 -1.442695, %v892_v55 }
 0x329   :  { %v1662_v37 = vmul.f32 -1.442695, %v899_v12 }
 0x32a   :  { %2079 = vpow2.f32 %v1661_v22 }
 0x32b   :  { %2081 = vpow2.f32 %v1662_v37 }
 0x334   :  { %v2080_v0 = vpop.eup %2079 }
 0x335   :  { %v896_v14 = vadd.f32 1.0, %v2080_v0  ;;  %v2082_v56 = vpop.eup %2081 }
 0x336   :  { %v903_v2 = vadd.f32 1.0, %v2082_v56 }
 0x337   :  { %2083 = vrcp.f32 %v896_v14 }
 0x338   :  { %2085 = vrcp.f32 %v903_v2 }
 0x341   :  { %v2084_v25 = vpop.eup %2083 }
 0x342   :  { %v906_v5 = vmul.f32 %v2084_v25, %v887_v31  ;;  %v2086_v53 = vpop.eup %2085 }
 0x343   :  { %v909_v57 = vsub.f32 1.0, %v2086_v53  ;;  %v911_v21 = vmul.f32 %v2086_v53, %v2609_v59 }
 0x344   :  { %v907_v8 = vadd.f32 %v906_v5, %v2510_v15 }
 0x346   :  { %2087 = vtanh.f32 %v907_v8 }
 0x350   :  { %v2088_v10 = vpop.eup %2087 }
 0x351   :  { %v910_v60 = vmul.f32 %v2088_v10, %v909_v57 }
 0x353   :  { %v2655_v58 = vadd.f32 %v911_v21, %v910_v60 }
 0x355   :  { %v923_v1 = vpack.c.bf16 %v2655_v58, %v2655_v58 }
 0x357   :  { %957 = vmatmul.mubr.bf16.vlgmr.msra.gmra.mrb[28].mxu0 %v923_v1  ;;  %1876 = vmatmul.mubr.bf16.vlgmr.msra.gmra.mrb[20].mxu1 %v923_v1 }
 0x358   :  { %1038 = vmatpush1.bf16.msra.mxu0 %v2288_v26  ;;  %1880 = vmatpush3.bf16.msra.mxu1 %v2330_v34 }
 0x359   :  { %1039 = vmatprep.subr.bf16.mxu0 %v2294_v27  ;;  %1881 = vmatprep.subr.bf16.mxu1 %v2959_v6 }
 0x35a   :  { %1069 = vmatprep.mubr.bf16.mxu0 %v2960_v16  ;;  %1895 = vmatprep.mubr.msk.bf16.mxu1 %vm2165_vm0, %v2959_v6 }
 0x35c   :  { %1040 = vmatpush1.bf16.msra.mxu0 %v2303_v29  ;;  %1882 = vmatpush3.bf16.msra.mxu1 %v2353_v39 }
 0x35d   :  { %1041 = vmatprep.subr.bf16.mxu0 %v2310_v30  ;;  %1883 = vmatprep.subr.bf16.mxu1 %v2959_v6 }
 0x360   :  { %1042 = vmatpush1.bf16.msra.mxu0 %v2319_v32  ;;  %1884 = vmatpush3.bf16.msra.mxu1 %v2372_v42 }
 0x361   :  { %1043 = vmatprep.subr.bf16.mxu0 %v2325_v33  ;;  %1885 = vmatprep.subr.bf16.mxu1 %v2959_v6 }
 0x364   :  { %1044 = vmatpush1.bf16.msra.mxu0 %v2337_v36  ;;  %1886 = vmatpush3.bf16.msra.mxu1 %v2395_v46 }
 0x365   :  { %1045 = vmatprep.subr.bf16.mxu0 %v2347_v38  ;;  %1887 = vmatprep.subr.bf16.mxu1 %v2959_v6 }
 0x368   :  { %1046 = vmatpush1.bf16.msra.mxu0 %v2360_v40  ;;  %1888 = vmatpush3.bf16.msra.mxu1 %v2416_v49 }
 0x369   :  { %1047 = vmatprep.subr.bf16.mxu0 %v2366_v41  ;;  %1889 = vmatprep.subr.bf16.mxu1 %v2959_v6 }
 0x36c   :  { %1048 = vmatpush1.bf16.msra.mxu0 %v2382_v44  ;;  %1890 = vmatpush3.bf16.msra.mxu1 %v2431_v51 }
 0x36d   :  { %1049 = vmatprep.subr.bf16.mxu0 %v2389_v45  ;;  %1891 = vmatprep.subr.bf16.mxu1 %v2959_v6 }
 0x370   :  { %1050 = vmatpush1.bf16.msra.mxu0 %v2404_v47  ;;  %1892 = vmatpush3.bf16.msra.mxu1 %v2440_v52 }
 0x371   :  { %1051 = vmatprep.subr.bf16.mxu0 %v2410_v48  ;;  %1893 = vmatprep.subr.bf16.mxu1 %v2959_v6 }
 0x374   :  { %1052 = vmatpush1.bf16.msra.mxu0 %v2423_v50  ;;  %1894 = vmatpush3.bf16.msra.mxu1 %v2450_v54 }
 0x375   :  { %1150 = vmatprep.subr.bf16.mxu0 %v2280_v24  ;;  %1899 = vmatprep.subr.bf16.mxu1 %v2959_v6 }
 0x42a   :  { %v958_v15 = vpop.f32.mrb[28].mxu0  ;;  %v999_v59 = vpop.f32.mrb[20].mxu1 }
 0x42b   :  { %v959_v20 = vadd.f32 %v958_v15, %v2551_v7  ;;  %v960_v62 = vpop.f32.mrb[29].mxu0  ;;  %v1877_v63 = vpop.f32.mrb[21].mxu1  ;;  %v1000_v25 = vadd.f32 %v999_v59, %v2559_v61 }
 0x42c   :  { %v961_v35 = vadd.f32 %v960_v62, %v2553_v11  ;;  %v962_v4 = vpop.f32.mrb[30].mxu0  ;;  %v1002_v55 = vpop.f32.mrb[22].mxu1 }
 0x42d   :  { %v1005_v9 = vadd.f32 %v959_v20, %v2507_v13  ;;  %v963_v18 = vpop.f32.mrb[31].mxu0  ;;  %v1878_v12 = vpop.f32.mrb[23].mxu1 }
 0x42e   :  { %v1012_v22 = vadd.f32 %v961_v35, %v2512_v17 }
 0x42f   :  { %v1663_v37 = vmul.f32 -1.442695, %v1005_v9 }
 0x430   :  { %v1664_v0 = vmul.f32 -1.442695, %v1012_v22 }
 0x431   :  { %2089 = vpow2.f32 %v1663_v37 }
 0x432   :  { %2091 = vpow2.f32 %v1664_v0 }
 0x43b   :  { %v2090_v14 = vpop.eup %2089 }
 0x43c   :  { %v1009_v56 = vadd.f32 1.0, %v2090_v14  ;;  %v2092_v2 = vpop.eup %2091 }
 0x43d   :  { %v1016_v31 = vadd.f32 1.0, %v2092_v2 }
 0x43e   :  { %2093 = vrcp.f32 %v1009_v56 }
 0x43f   :  { %2095 = vrcp.f32 %v1016_v31 }
 0x448   :  { %v2094_v5 = vpop.eup %2093 }
 0x449   :  { %v1019_v8 = vmul.f32 %v2094_v5, %v1000_v25  ;;  %v2096_v53 = vpop.eup %2095 }
 0x44a   :  { %v1022_v57 = vsub.f32 1.0, %v2096_v53  ;;  %v1024_v60 = vmul.f32 %v2096_v53, %v2655_v58  ;;  %v2754_v53 = vld [vmem:[%s2939_s2] ss:$12 sps:$4 sm:$0xff]  }
 0x44b   :  { %v1020_v13 = vadd.f32 %v1019_v8, %v2515_v19 }
 0x44d   :  { %2097 = vtanh.f32 %v1020_v13 }
 0x457   :  { %v2098_v17 = vpop.eup %2097 }
 0x458   :  { %v1023_v10 = vmul.f32 %v2098_v17, %v1022_v57 }
 0x45a   :  { %v2701_v21 = vadd.f32 %v1024_v60, %v1023_v10  ;;  %v2962_v10 = vld [vmem:[#allocation7_spill] sm:$0xff] }
 0x45c   :  { %v1036_v1 = vpack.c.bf16 %v2701_v21, %v2701_v21 }
 0x45e   :  { %1070 = vmatmul.mubr.bf16.vlgmr.msra.gmra.mrb[32].mxu0 %v1036_v1  ;;  %1896 = vmatmul.mubr.bf16.vlgmr.msra.gmra.mrb[24].mxu1 %v1036_v1 }
 0x45f   :  { %1151 = vmatpush1.bf16.msra.mxu0 %v2288_v26  ;;  %1900 = vmatpush3.bf16.msra.mxu1 %v2330_v34 }
 0x460   :  { %1152 = vmatprep.subr.bf16.mxu0 %v2294_v27  ;;  %1901 = vmatprep.subr.bf16.mxu1 %v2959_v6 }
 0x461   :  { %1182 = vmatprep.mubr.bf16.mxu0 %v2960_v16  ;;  %1915 = vmatprep.mubr.msk.bf16.mxu1 %vm2165_vm0, %v2959_v6 }
 0x463   :  { %1153 = vmatpush1.bf16.msra.mxu0 %v2303_v29  ;;  %1902 = vmatpush3.bf16.msra.mxu1 %v2353_v39 }
 0x464   :  { %1154 = vmatprep.subr.bf16.mxu0 %v2310_v30  ;;  %1903 = vmatprep.subr.bf16.mxu1 %v2959_v6 }
 0x467   :  { %1155 = vmatpush1.bf16.msra.mxu0 %v2319_v32  ;;  %1904 = vmatpush3.bf16.msra.mxu1 %v2372_v42 }
 0x468   :  { %1156 = vmatprep.subr.bf16.mxu0 %v2325_v33  ;;  %1905 = vmatprep.subr.bf16.mxu1 %v2959_v6 }
 0x46b   :  { %1157 = vmatpush1.bf16.msra.mxu0 %v2337_v36  ;;  %1906 = vmatpush3.bf16.msra.mxu1 %v2395_v46 }
 0x46c   :  { %1158 = vmatprep.subr.bf16.mxu0 %v2347_v38  ;;  %1907 = vmatprep.subr.bf16.mxu1 %v2959_v6 }
 0x46f   :  { %1159 = vmatpush1.bf16.msra.mxu0 %v2360_v40  ;;  %1908 = vmatpush3.bf16.msra.mxu1 %v2416_v49 }
 0x470   :  { %1160 = vmatprep.subr.bf16.mxu0 %v2366_v41  ;;  %1909 = vmatprep.subr.bf16.mxu1 %v2959_v6 }
 0x473   :  { %1161 = vmatpush1.bf16.msra.mxu0 %v2382_v44  ;;  %1910 = vmatpush3.bf16.msra.mxu1 %v2431_v51 }
 0x474   :  { %1162 = vmatprep.subr.bf16.mxu0 %v2389_v45  ;;  %1911 = vmatprep.subr.bf16.mxu1 %v2959_v6 }
 0x477   :  { %1163 = vmatpush1.bf16.msra.mxu0 %v2404_v47  ;;  %1912 = vmatpush3.bf16.msra.mxu1 %v2440_v52 }
 0x478   :  { %1164 = vmatprep.subr.bf16.mxu0 %v2410_v48  ;;  %1913 = vmatprep.subr.bf16.mxu1 %v2959_v6 }
 0x47b   :  { %1165 = vmatpush1.bf16.msra.mxu0 %v2423_v50  ;;  %1914 = vmatpush3.bf16.msra.mxu1 %v2450_v54 }
 0x47c   :  { %1263 = vmatprep.subr.bf16.mxu0 %v2280_v24  ;;  %1919 = vmatprep.subr.bf16.mxu1 %v2959_v6 }
 0x531   :  { %v1071_v26 = vpop.f32.mrb[32].mxu0  ;;  %v1112_v27 = vpop.f32.mrb[24].mxu1 }
 0x532   :  { %v1072_v19 = vadd.f32 %v1071_v26, %v2551_v7  ;;  %v1073_v58 = vpop.f32.mrb[33].mxu0  ;;  %v1897_v15 = vpop.f32.mrb[25].mxu1  ;;  %v1113_v0 = vadd.f32 %v1112_v27, %v2559_v61 }
 0x533   :  { %v1074_v59 = vadd.f32 %v1073_v58, %v2553_v11  ;;  %v1075_v20 = vpop.f32.mrb[34].mxu0  ;;  %v1115_v62 = vpop.f32.mrb[26].mxu1  ;;  %v2142_v15 = vld [vmem:[%s2939_s2 + $0x8] ss:$12 sps:$4 sm:$0xff]  }
 0x534   :  { %v1118_v63 = vadd.f32 %v1072_v19, %v2520_v23  ;;  %v1076_v35 = vpop.f32.mrb[35].mxu0  ;;  %v1898_v4 = vpop.f32.mrb[27].mxu1  ;;  %v2144_v20 = vld [vmem:[%s2939_s2 + $0x20] ss:$12 sps:$4 sm:$0xff]  }
 0x535   :  { %v1125_v55 = vadd.f32 %v1074_v59, %v2522_v28  ;;  %v2143_v59 = vld [vmem:[%s2939_s2 + $0x18] ss:$12 sps:$4 sm:$0xff]   ;;  %v2145_v62 = vld [vmem:[%s2939_s2 + $0x34] ss:$12 sps:$4 sm:$0xff]  }
 0x536   :  { %v1665_v9 = vmul.f32 -1.442695, %v1118_v63  ;;  %v2147_v63 = vld [vmem:[%s2939_s2 + $0x38] ss:$12 sps:$4 sm:$0xff]   ;;  %v2149_v4 = vld [vmem:[%s2939_s2 + $0x48] ss:$12 sps:$4 sm:$0xff]  }
 0x537   :  { %v1666_v24 = vmul.f32 -1.442695, %v1125_v55  ;;  %v2148_v35 = vld [vmem:[%s2939_s2 + $0x4c] ss:$12 sps:$4 sm:$0xff]   ;;  %v2150_v55 = vld [vmem:[%s2939_s2 + $0x50] ss:$12 sps:$4 sm:$0xff]  }
 0x538   :  { %2099 = vpow2.f32 %v1665_v9  ;;  %v2151_v9 = vld [vmem:[%s2939_s2 + $0x64] ss:$12 sps:$4 sm:$0xff]  }
 0x539   :  { %2101 = vpow2.f32 %v1666_v24  ;;  %v2152_v24 = vld [vmem:[%s2939_s2 + $0x60] ss:$12 sps:$4 sm:$0xff]  }
 0x542   :  { %v2100_v18 = vpop.eup %2099 }
 0x543   :  { %v1122_v12 = vadd.f32 1.0, %v2100_v18  ;;  %v2102_v22 = vpop.eup %2101  ;;  %v2153_v18 = vld [vmem:[%s2939_s2 + $0x68] ss:$12 sps:$4 sm:$0xff]  }
 0x544   :  { %v1129_v37 = vadd.f32 1.0, %v2102_v22  ;;  %v2155_v22 = vld [vmem:[%s2939_s2 + $0x78] ss:$12 sps:$4 sm:$0xff]  }
 0x545   :  { %2103 = vrcp.f32 %v1122_v12  ;;  %v2154_v12 = vld [vmem:[%s2939_s2 + $0x7c] ss:$12 sps:$4 sm:$0xff]  }
 0x546   :  { %2105 = vrcp.f32 %v1129_v37  ;;  %v2156_v37 = vld [vmem:[%s2939_s2 + $0x80] ss:$12 sps:$4 sm:$0xff]  }
 0x54f   :  { %v2104_v14 = vpop.eup %2103 }
 0x550   :  { %v1132_v56 = vmul.f32 %v2104_v14, %v1113_v0  ;;  %v2106_v2 = vpop.eup %2105  ;;  %v2157_v0 = vld [vmem:[%s2939_s2 + $0x94] ss:$12 sps:$4 sm:$0xff]   ;;  %v2158_v14 = vld [vmem:[%s2939_s2 + $0x90] ss:$12 sps:$4 sm:$0xff]  }
 0x551   :  { %v1135_v31 = vsub.f32 1.0, %v2106_v2  ;;  %v1137_v5 = vmul.f32 %v2106_v2, %v2701_v21  ;;  %v2161_v2 = vld [vmem:[%s2939_s2 + $0xa8] ss:$12 sps:$4 sm:$0xff]  }
 0x552   :  { %v1133_v23 = vadd.f32 %v1132_v56, %v2532_v3  ;;  %v2761_v3 = vld [vmem:[%s2939_s2 + $0x1c] ss:$12 sps:$4 sm:$0xff]   ;;  %v2159_v56 = vld [vmem:[%s2939_s2 + $0x98] ss:$12 sps:$4 sm:$0xff]  }
 0x554   :  { %2107 = vtanh.f32 %v1133_v23  ;;  %v2160_v23 = vld [vmem:[%s2939_s2 + $0xac] ss:$12 sps:$4 sm:$0xff]  }
 0x55e   :  { %v2108_v28 = vpop.eup %2107 }
 0x55f   :  { %v1136_v25 = vmul.f32 %v2108_v28, %v1135_v31  ;;  %v2162_v31 = vld [vmem:[%s2939_s2 + $0xb0] ss:$12 sps:$4 sm:$0xff]  }
 0x561   :  { %v2747_v8 = vadd.f32 %v1137_v5, %v1136_v25 }
 0x563   :  { %v1149_v13 = vpack.c.bf16 %v2747_v8, %v2747_v8 }
 0x565   :  { %1183 = vmatmul.mubr.bf16.vlgmr.msra.gmra.mrb[36].mxu0 %v1149_v13  ;;  %1916 = vmatmul.mubr.bf16.vlgmr.msra.gmra.mrb[28].mxu1 %v1149_v13 }
 0x566   :  { %1264 = vmatpush1.bf16.msra.mxu0 %v2754_v53  ;;  %1920 = vmatpush3.bf16.msra.mxu1 %v2330_v34 }
 0x567   :  { %1265 = vmatprep.subr.bf16.mxu0 %v2761_v3  ;;  %1921 = vmatprep.subr.bf16.mxu1 %v2959_v6 }
 0x568   :  { %1295 = vmatprep.mubr.bf16.mxu0 %v2960_v16  ;;  %1935 = vmatprep.mubr.msk.bf16.mxu1 %vm2165_vm0, %v2959_v6 }
 0x56a   :  { %1266 = vmatpush1.bf16.msra.mxu0 %v2303_v29  ;;  %1922 = vmatpush3.bf16.msra.mxu1 %v2353_v39  ;;  %v2141_v29 = vld [vmem:[%s2939_s2 + $0x4] ss:$12 sps:$4 sm:$0xff]  }
 0x56b   :  { %1267 = vmatprep.subr.bf16.mxu0 %v2310_v30  ;;  %1923 = vmatprep.subr.bf16.mxu1 %v2959_v6 }
 0x56e   :  { %1268 = vmatpush1.bf16.msra.mxu0 %v2319_v32  ;;  %1924 = vmatpush3.bf16.msra.mxu1 %v2372_v42 }
 0x56f   :  { %1269 = vmatprep.subr.bf16.mxu0 %v2325_v33  ;;  %1925 = vmatprep.subr.bf16.mxu1 %v2959_v6 }
 0x572   :  { %1270 = vmatpush1.bf16.msra.mxu0 %v2337_v36  ;;  %1926 = vmatpush3.bf16.msra.mxu1 %v2395_v46 }
 0x573   :  { %1271 = vmatprep.subr.bf16.mxu0 %v2347_v38  ;;  %1927 = vmatprep.subr.bf16.mxu1 %v2959_v6 }
 0x576   :  { %1272 = vmatpush1.bf16.msra.mxu0 %v2360_v40  ;;  %1928 = vmatpush3.bf16.msra.mxu1 %v2416_v49 }
 0x577   :  { %1273 = vmatprep.subr.bf16.mxu0 %v2366_v41  ;;  %1929 = vmatprep.subr.bf16.mxu1 %v2959_v6 }
 0x57a   :  { %1274 = vmatpush1.bf16.msra.mxu0 %v2382_v44  ;;  %1930 = vmatpush3.bf16.msra.mxu1 %v2431_v51 }
 0x57b   :  { %1275 = vmatprep.subr.bf16.mxu0 %v2389_v45  ;;  %1931 = vmatprep.subr.bf16.mxu1 %v2959_v6  ;;  %v2961_v45 = vld [vmem:[#allocation5_spill] sm:$0xff] }
 0x57e   :  { %1276 = vmatpush1.bf16.msra.mxu0 %v2404_v47  ;;  %1932 = vmatpush3.bf16.msra.mxu1 %v2440_v52 }
 0x57f   :  { %1277 = vmatprep.subr.bf16.mxu0 %v2410_v48  ;;  %1933 = vmatprep.subr.bf16.mxu1 %v2959_v6 }
 0x582   :  { %1278 = vmatpush1.bf16.msra.mxu0 %v2423_v50  ;;  %1934 = vmatpush3.bf16.msra.mxu1 %v2450_v54 }
 0x583   :  { %1376 = vmatprep.subr.bf16.mxu0 %v2141_v29  ;;  %1939 = vmatprep.subr.bf16.mxu1 %v2959_v6 }
 0x638   :  { %v1184_v30 = vpop.f32.mrb[36].mxu0  ;;  %v1225_v32 = vpop.f32.mrb[28].mxu1 }
 0x639   :  { %v1185_v33 = vadd.f32 %v1184_v30, %v2551_v7  ;;  %v1186_v34 = vpop.f32.mrb[37].mxu0  ;;  %v1917_v36 = vpop.f32.mrb[29].mxu1  ;;  %v1226_v54 = vadd.f32 %v1225_v32, %v2559_v61  ;;  %v2963_v30 = vld [vmem:[#allocation8_spill] sm:$0xff] }
 0x63a   :  { %v1187_v38 = vadd.f32 %v1186_v34, %v2553_v11  ;;  %v1188_v39 = vpop.f32.mrb[38].mxu0  ;;  %v1228_v40 = vpop.f32.mrb[30].mxu1  ;;  %v2964_v36 = vld [vmem:[#allocation9_spill] sm:$0xff] }
 0x63b   :  { %v1231_v41 = vadd.f32 %v1185_v33, %v2524_v43  ;;  %v1189_v42 = vpop.f32.mrb[39].mxu0  ;;  %v1918_v44 = vpop.f32.mrb[31].mxu1 }
 0x63c   :  { %v1238_v46 = vadd.f32 %v1187_v38, %v2961_v45 }
 0x63d   :  { %v1667_v47 = vmul.f32 -1.442695, %v1231_v41 }
 0x63e   :  { %v1668_v48 = vmul.f32 -1.442695, %v1238_v46 }
 0x63f   :  { %2109 = vpow2.f32 %v1667_v47 }
 0x640   :  { %2111 = vpow2.f32 %v1668_v48 }
 0x649   :  { %v2110_v49 = vpop.eup %2109 }
 0x64a   :  { %v1235_v50 = vadd.f32 1.0, %v2110_v49  ;;  %v2112_v51 = vpop.eup %2111  ;;  %v2965_v49 = vld [vmem:[#allocation4_spill] sm:$0xff] }
 0x64b   :  { %v1242_v52 = vadd.f32 1.0, %v2112_v51 }
 0x64c   :  { %2113 = vrcp.f32 %v1235_v50 }
 0x64d   :  { %2115 = vrcp.f32 %v1242_v52 }
 0x656   :  { %v2114_v57 = vpop.eup %2113 }
 0x657   :  { %v1245_v17 = vmul.f32 %v2114_v57, %v1226_v54  ;;  %v2116_v60 = vpop.eup %2115 }
 0x658   :  { %v1248_v21 = vsub.f32 1.0, %v2116_v60  ;;  %v1250_v27 = vmul.f32 %v2116_v60, %v2747_v8  ;;  %v2051_v60 = vld [vmem:[%s2942_s5] sm:$0xff]  }
 0x659   :  { %v1246_v43 = vadd.f32 %v1245_v17, %v2962_v10 }
 0x65b   :  { %2117 = vtanh.f32 %v1246_v43 }
 0x665   :  { %v2118_v1 = vpop.eup %2117 }
 0x666   :  { %v1249_v26 = vmul.f32 %v2118_v1, %v1248_v21  ;;  %v2052_v21 = vld [vmem:[%s2942_s5 + $0x8] sm:$0xff]   ;;  %v2053_v1 = vld [vmem:[%s2942_s5 + $0x10] sm:$0xff]  }
 0x668   :  { %v2805_v19 = vadd.f32 %v1250_v27, %v1249_v26  ;;  %v2054_v26 = vld [vmem:[%s2942_s5 + $0x18] sm:$0xff]   ;;  %v2055_v27 = vld [vmem:[%s2942_s5 + $0x20] sm:$0xff]  }
 0x66a   :  { %v1262_v58 = vpack.c.bf16 %v2805_v19, %v2805_v19 }
 0x66c   :  { %1296 = vmatmul.mubr.bf16.vlgmr.msra.gmra.mrb[40].mxu0 %v1262_v58  ;;  %1936 = vmatmul.mubr.bf16.vlgmr.msra.gmra.mrb[32].mxu1 %v1262_v58  ;;  %v2057_v58 = vld [vmem:[%s2942_s5 + $0x30] sm:$0xff]  }
 0x66d   :  { %1377 = vmatpush1.bf16.msra.mxu0 %v2754_v53  ;;  %1940 = vmatpush3.bf16.msra.mxu1 %v2142_v15  ;;  %v2058_v15 = vld [vmem:[%s2942_s5 + $0x38] sm:$0xff]  }
 0x66e   :  { %1378 = vmatprep.subr.bf16.mxu0 %v2761_v3  ;;  %1941 = vmatprep.subr.bf16.mxu1 %v2959_v6 }
 0x66f   :  { %1408 = vmatprep.mubr.bf16.mxu0 %v2960_v16  ;;  %1955 = vmatprep.mubr.msk.bf16.mxu1 %vm2165_vm0, %v2959_v6  ;;  %v2146_v16 = vld [vmem:[%s2939_s2 + $0x30] ss:$12 sps:$4 sm:$0xff]  }
 0x671   :  { %1379 = vmatpush1.bf16.msra.mxu0 %v2143_v59  ;;  %1942 = vmatpush3.bf16.msra.mxu1 %v2144_v20 }
 0x672   :  { %1380 = vmatprep.subr.bf16.mxu0 %v2145_v62  ;;  %1943 = vmatprep.subr.bf16.mxu1 %v2959_v6 }
 0x675   :  { %1381 = vmatpush1.bf16.msra.mxu0 %v2146_v16  ;;  %1944 = vmatpush3.bf16.msra.mxu1 %v2147_v63 }
 0x676   :  { %1382 = vmatprep.subr.bf16.mxu0 %v2148_v35  ;;  %1945 = vmatprep.subr.bf16.mxu1 %v2959_v6 }
 0x679   :  { %1383 = vmatpush1.bf16.msra.mxu0 %v2149_v4  ;;  %1946 = vmatpush3.bf16.msra.mxu1 %v2150_v55 }
 0x67a   :  { %1384 = vmatprep.subr.bf16.mxu0 %v2151_v9  ;;  %1947 = vmatprep.subr.bf16.mxu1 %v2959_v6  ;;  %v2966_v9 = vld [vmem:[#allocation10_spill] sm:$0xff] }
 0x67d   :  { %1385 = vmatpush1.bf16.msra.mxu0 %v2152_v24  ;;  %1948 = vmatpush3.bf16.msra.mxu1 %v2153_v18 }
 0x67e   :  { %1386 = vmatprep.subr.bf16.mxu0 %v2154_v12  ;;  %1949 = vmatprep.subr.bf16.mxu1 %v2959_v6 }
 0x681   :  { %1387 = vmatpush1.bf16.msra.mxu0 %v2155_v22  ;;  %1950 = vmatpush3.bf16.msra.mxu1 %v2156_v37  ;;  %v2967_v22 = vld [vmem:[#allocation11_spill] sm:$0xff] }
 0x682   :  { %1388 = vmatprep.subr.bf16.mxu0 %v2157_v0  ;;  %1951 = vmatprep.subr.bf16.mxu1 %v2959_v6 }
 0x685   :  { %1389 = vmatpush1.bf16.msra.mxu0 %v2158_v14  ;;  %1952 = vmatpush3.bf16.msra.mxu1 %v2159_v56 }
 0x686   :  { %1390 = vmatprep.subr.bf16.mxu0 %v2160_v23  ;;  %1953 = vmatprep.subr.bf16.mxu1 %v2959_v6 }
 0x689   :  { %1391 = vmatpush1.bf16.msra.mxu0 %v2161_v2  ;;  %1954 = vmatpush3.bf16.msra.mxu1 %v2162_v31 }
 0x68a   :  { %1959 = vmatprep.subr.bf16.mxu0 %v2959_v6 }
 0x73f   :  { %v1297_v28 = vpop.f32.mrb[40].mxu0  ;;  %v1338_v25 = vpop.f32.mrb[32].mxu1 }
 0x740   :  { %v1298_v5 = vadd.f32 %v1297_v28, %v2551_v7  ;;  %v1299_v8 = vpop.f32.mrb[41].mxu0  ;;  %v1937_v13 = vpop.f32.mrb[33].mxu1  ;;  %v1339_v46 = vadd.f32 %v1338_v25, %v2559_v61  ;;  %v2968_v28 = vld [vmem:[#allocation6_spill] sm:$0xff] }
 0x741   :  { %v1300_v53 = vadd.f32 %v1299_v8, %v2553_v11  ;;  %v1301_v3 = vpop.f32.mrb[42].mxu0  ;;  %v1341_v29 = vpop.f32.mrb[34].mxu1 }
 0x742   :  { %v1344_v32 = vadd.f32 %v1298_v5, %v2963_v30  ;;  %v1302_v33 = vpop.f32.mrb[43].mxu0  ;;  %v1938_v34 = vpop.f32.mrb[35].mxu1 }
 0x743   :  { %v1351_v38 = vadd.f32 %v1300_v53, %v2964_v36 }
 0x744   :  { %v1669_v39 = vmul.f32 -1.442695, %v1344_v32  ;;  %v1673_v32 = vld [vmem:[%s2943_s6] ss:$0 sm:$0xff] }
 0x745   :  { %v1670_v40 = vmul.f32 -1.442695, %v1351_v38 }
 0x746   :  { %2119 = vpow2.f32 %v1669_v39 }
 0x747   :  { %2121 = vpow2.f32 %v1670_v40 }
 0x750   :  { %v2120_v41 = vpop.eup %2119 }
 0x751   :  { %v1348_v42 = vadd.f32 1.0, %v2120_v41  ;;  %v2122_v44 = vpop.eup %2121 }
 0x752   :  { %v1355_v45 = vadd.f32 1.0, %v2122_v44 }
 0x753   :  { %2123 = vrcp.f32 %v1348_v42 }
 0x754   :  { %2125 = vrcp.f32 %v1355_v45 }
 0x75d   :  { %v2124_v47 = vpop.eup %2123 }
 0x75e   :  { %v1358_v48 = vmul.f32 %v2124_v47, %v1339_v46  ;;  %v2126_v51 = vpop.eup %2125 }
 0x75f   :  { %v1361_v52 = vsub.f32 1.0, %v2126_v51  ;;  %v1363_v17 = vmul.f32 %v2126_v51, %v2805_v19  ;;  %v2056_v19 = vld [vmem:[%s2942_s5 + $0x28] sm:$0xff]  }
 0x760   :  { %v1359_v50 = vadd.f32 %v1358_v48, %v2965_v49 }
 0x762   :  { %2127 = vtanh.f32 %v1359_v50 }
 0x76c   :  { %v2128_v54 = vpop.eup %2127 }
 0x76d   :  { %v1362_v57 = vmul.f32 %v2128_v54, %v1361_v52 }
 0x76f   :  { %v1364_v10 = vadd.f32 %v1363_v17, %v1362_v57 }
 0x771   :  { %v1375_v43 = vpack.c.bf16 %v1364_v10, %v1364_v10 }
 0x773   :  { %1409 = vmatmul.mubr.bf16.vlgmr.msra.gmra.mrb[44].mxu0 %v1375_v43  ;;  %1956 = vmatmul.mubr.bf16.vlgmr.msra.gmra.mrb[36].mxu1 %v1375_v43 }
 0x774   :  { %1975 = vmatprep.mubr.msk.bf16.mxu0 %vm2165_vm0, %v2959_v6  ;;  %1960 = vmatpush3.bf16.msra.mxu0 %v2051_v60 }
 0x775   :  { %1961 = vmatprep.subr.bf16.mxu0 %v2959_v6 }
 0x778   :  { %1962 = vmatpush3.bf16.msra.mxu0 %v2052_v21 }
 0x779   :  { %1963 = vmatprep.subr.bf16.mxu0 %v2959_v6 }
 0x77c   :  { %1964 = vmatpush3.bf16.msra.mxu0 %v2053_v1 }
 0x77d   :  { %1965 = vmatprep.subr.bf16.mxu0 %v2959_v6 }
 0x780   :  { %1966 = vmatpush3.bf16.msra.mxu0 %v2054_v26 }
 0x781   :  { %1967 = vmatprep.subr.bf16.mxu0 %v2959_v6 }
 0x784   :  { %1968 = vmatpush3.bf16.msra.mxu0 %v2055_v27 }
 0x785   :  { %1969 = vmatprep.subr.bf16.mxu0 %v2959_v6 }
 0x788   :  { %1970 = vmatpush3.bf16.msra.mxu0 %v2056_v19 }
 0x789   :  { %1971 = vmatprep.subr.bf16.mxu0 %v2959_v6 }
 0x78c   :  { %1972 = vmatpush3.bf16.msra.mxu0 %v2057_v58 }
 0x78d   :  { %1973 = vmatprep.subr.bf16.mxu0 %v2959_v6 }
 0x790   :  { %1974 = vmatpush3.bf16.msra.mxu0 %v2058_v15 }
 0x846   :  { %v1410_v59 = vpop.f32.mrb[44].mxu0  ;;  %v1451_v20 = vpop.f32.mrb[36].mxu1 }
 0x847   :  { %v1411_v62 = vadd.f32 %v1410_v59, %v2551_v7  ;;  %v1412_v16 = vpop.f32.mrb[45].mxu0  ;;  %v1957_v63 = vpop.f32.mrb[37].mxu1  ;;  %v1452_v2 = vadd.f32 %v1451_v20, %v2559_v61 }
 0x848   :  { %v1413_v35 = vadd.f32 %v1412_v16, %v2553_v11  ;;  %v1414_v4 = vpop.f32.mrb[46].mxu0  ;;  %v1454_v55 = vpop.f32.mrb[38].mxu1 }
 0x849   :  { %v1457_v24 = vadd.f32 %v1411_v62, %v2966_v9  ;;  %v1415_v18 = vpop.f32.mrb[47].mxu0  ;;  %v1958_v12 = vpop.f32.mrb[39].mxu1 }
 0x84a   :  { %v1464_v37 = vadd.f32 %v1413_v35, %v2967_v22 }
 0x84b   :  { %v1671_v0 = vmul.f32 -1.442695, %v1457_v24 }
 0x84c   :  { %v1672_v6 = vmul.f32 -1.442695, %v1464_v37 }
 0x84d   :  { %2129 = vpow2.f32 %v1671_v0 }
 0x84e   :  { %2131 = vpow2.f32 %v1672_v6 }
 0x857   :  { %v2130_v14 = vpop.eup %2129 }
 0x858   :  { %v1461_v56 = vadd.f32 1.0, %v2130_v14  ;;  %v2132_v7 = vpop.eup %2131 }
 0x859   :  { %v1468_v23 = vadd.f32 1.0, %v2132_v7 }
 0x85a   :  { %2133 = vrcp.f32 %v1461_v56 }
 0x85b   :  { %2135 = vrcp.f32 %v1468_v23 }
 0x864   :  { %v2134_v11 = vpop.eup %2133 }
 0x865   :  { %v1471_v31 = vmul.f32 %v2134_v11, %v1452_v2  ;;  %v2136_v5 = vpop.eup %2135 }
 0x866   :  { %v1474_v8 = vsub.f32 1.0, %v2136_v5  ;;  %v1476_v3 = vmul.f32 %v2136_v5, %v1364_v10 }
 0x867   :  { %v1472_v25 = vadd.f32 %v1471_v31, %v2968_v28 }
 0x869   :  { %2137 = vtanh.f32 %v1472_v25 }
 0x873   :  { %v2138_v13 = vpop.eup %2137 }
 0x874   :  { %v1475_v53 = vmul.f32 %v2138_v13, %v1474_v8 }
 0x876   :  { %v1477_v29 = vadd.f32 %v1476_v3, %v1475_v53 }
 0x878   :  { %v1488_v30 = vpack.c.bf16 %v1477_v29, %v1477_v29 }
 0x87a   :  { %1976 = vmatmul.mubr.bf16.vlgmr.msra.gmra.mrb[48].mxu0 %v1488_v30 }
 0x94d   :  { %v1594_v33 = vpop.f32.mrb[48].mxu0 }
 0x94e   :  { %v1595_v61 = vadd.f32 %v1673_v32, %v1594_v33  ;;  %v1977_v34 = vpop.f32.mrb[49].mxu0 }
 0x94f   :  { %v1597_v36 = vpop.f32.mrb[50].mxu0 }
 0x950   :  { %1600 = vst [vmem:[%s2944_s7] sm:$0xff] %v1595_v61  ;;  %v1978_v38 = vpop.f32.mrb[51].mxu0 }

</bundles_post_ra>
